<compile_context>
chip_gen: v6e
topology: v6e:2x2x1
jax: 0.10.0
libtpu: 0.0.40
codegen_flags: <defaults>
</compile_context>

<pallas_src>
import functools
import math

import jax
import jax.numpy as jnp
from jax import lax
from jax.experimental import pallas as pl
from jax.experimental.pallas import tpu as pltpu

D_MODEL = 32
N_HEAD = 4
HEAD_DIM = D_MODEL // N_HEAD
D_FF = 64
EPS = 1e-5
NEG_INF = -1e30

_PARAM_ORDER = ["wqk", "bqk", "wv", "bv", "wo", "bo",
                "g1", "be1", "w1", "bf1", "w2", "bf2", "g2", "be2"]


def _layernorm(x, gamma, beta):
    mu = jnp.mean(x, axis=-1, keepdims=True)
    var = jnp.mean(jnp.square(x - mu), axis=-1, keepdims=True)
    return (x - mu) * lax.rsqrt(var + EPS) * gamma + beta


def encoder_kernel(src_ref, pos_ref,
                   wqk_ref, bqk_ref, wv_ref, bv_ref, wo_ref, bo_ref,
                   g1_ref, be1_ref, w1_ref, bf1_ref, w2_ref, bf2_ref,
                   g2_ref, be2_ref, gf_ref, bfn_ref,
                   out_ref, *, seq_len, apply_final_norm, exact_softmax):
    BS, D = src_ref.shape                 # (B*S, d_model) -- whole batch, one block
    L = wqk_ref.shape[0]                  # num_layers (weights stacked on axis 0)
    H = N_HEAD
    Hd = D // H
    B = BS // seq_len
    f32 = jnp.float32
    cdt = wqk_ref.dtype                   # MXU operand dtype (bf16 by default)

    x = src_ref[...].astype(f32)          # running activation, (BS, D)
    pos = pos_ref[...].astype(f32)

    # ---- masks, generated in-kernel (no HBM mask input) and hoisted out of
    # the layer loop.  Built from 2-D iota + static range compares only
    # (no vector integer div/mod, no mask concatenation).
    # block_mask[h*BS + i, c] = 1.0 iff lane c belongs to head h.
    r_bm = lax.broadcasted_iota(jnp.int32, (H * BS, D), 0)
    c_bm = lax.broadcasted_iota(jnp.int32, (H * BS, D), 1)
    bm = None
    for h in range(H):
        term = ((r_bm >= h * BS) & (r_bm < (h + 1) * BS) &
                (c_bm >= h * Hd) & (c_bm < (h + 1) * Hd))
        bm = term if bm is None else (bm | term)
    block_mask = bm.astype(f32)                                   # (H*BS, D)

    # in_batch[h*BS + i, j] = True iff query i and key j are in the same batch.
    r_ib = lax.broadcasted_iota(jnp.int32, (H * BS, BS), 0)
    c_ib = lax.broadcasted_iota(jnp.int32, (H * BS, BS), 1)
    in_batch = None
    for h in range(H):
        for b in range(B):
            lo = h * BS + b * seq_len
            term = ((r_ib >= lo) & (r_ib < lo + seq_len) &
                    (c_ib >= b * seq_len) & (c_ib < (b + 1) * seq_len))
            in_batch = term if in_batch is None else (in_batch | term)

    for l in range(L):                    # static unroll; weights already in VMEM
        # --- projections: fused Q|K of (x + pos), V of x.  1/sqrt(Hd) is
        # pre-folded into the Q half of wqk/bqk on the host.
        xp = (x + pos).astype(cdt)
        qk = jnp.dot(xp, wqk_ref[l], preferred_element_type=f32) + bqk_ref[l]
        v = jnp.dot(x.astype(cdt), wv_ref[l],
                    preferred_element_type=f32) + bv_ref[l]
        q = qk[:, :D]
        k = qk[:, D:]

        # --- all-head attention: ONE score matmul, ONE softmax pass, ONE PV
        # matmul.  Heads stacked along sublanes:
        #   q_exp[h*BS + i, :] = q[i, :] masked to head h's lanes
        #   s[h*BS + i, j]     = <q_i, k_j> restricted to head h
        q_exp = jnp.concatenate([q] * H, axis=0) * block_mask     # (H*BS, D)
        s = lax.dot_general(q_exp.astype(cdt), k.astype(cdt),
                            (((1,), (1,)), ((), ())),
                            preferred_element_type=f32)           # (H*BS, BS)
        # Mask cross-batch keys BEFORE the max (fixes underflow/NaN edge case).
        s = jnp.where(in_batch, s, NEG_INF)
        m = jnp.max(s, axis=-1, keepdims=True)
        p = jnp.exp(s - m)
        denom = jnp.sum(p, axis=-1, keepdims=True)
        if exact_softmax:
            p = p / denom
        else:
            p = p * pl.reciprocal(denom, approx=True)             # EUP slot

        o_exp = jnp.dot(p.astype(cdt), v.astype(cdt),
                        preferred_element_type=f32)               # (H*BS, D)
        o_exp = o_exp * block_mask        # keep only head h's lanes per block
        attn = o_exp[0:BS]
        for h in range(1, H):
            attn = attn + o_exp[h * BS:(h + 1) * BS]              # (BS, D)

        attn = jnp.dot(attn.astype(cdt), wo_ref[l],
                       preferred_element_type=f32) + bo_ref[l]

        # --- residual + norm1 ---
        x = _layernorm(x + attn, g1_ref[l], be1_ref[l])

        # --- feed-forward (ReLU) ---
        h1 = jnp.maximum(
            jnp.dot(x.astype(cdt), w1_ref[l],
                    preferred_element_type=f32) + bf1_ref[l], 0.0)
        ff = jnp.dot(h1.astype(cdt), w2_ref[l],
                     preferred_element_type=f32) + bf2_ref[l]

        # --- residual + norm2 ---
        x = _layernorm(x + ff, g2_ref[l], be2_ref[l])

    if apply_final_norm:                  # static flag; matches `norm is not None`
        x = _layernorm(x, gf_ref[...], bfn_ref[...])

    out_ref[...] = x.astype(out_ref.dtype)


def transformer_encoder(src, pos, layer_params, norm_params=None, *,
                        matmul_dtype=jnp.bfloat16, exact_softmax=False):
    """Mirrors TransformerEncoder.forward(src, pos). src/pos: (B, S, D)."""
    B, S, D = src.shape
    f32 = jnp.float32

    # Stack per-layer params with a leading num_layers axis (VMEM resident).
    stacked = {k: jnp.stack([jnp.asarray(p[k], f32) for p in layer_params])
               for k in _PARAM_ORDER}

    # Fold the 1/sqrt(head_dim) attention scale into the Q half of the fused
    # QK projection weight/bias (static weights -> zero runtime cost).
    scale = 1.0 / math.sqrt(HEAD_DIM)
    qk_scale = jnp.concatenate(
        [jnp.full((D,), scale, f32), jnp.ones((D,), f32)])        # (2D,)
    stacked["wqk"] = stacked["wqk"] * qk_scale
    stacked["bqk"] = stacked["bqk"] * qk_scale

    # Pre-cast MXU weight operands (bf16 for v6e/v7x per review); biases and
    # LayerNorm params stay f32 (accumulation / normalisation stay f32).
    for name in ("wqk", "wv", "wo", "w1", "w2"):
        stacked[name] = stacked[name].astype(matmul_dtype)

    args = [stacked[k] for k in _PARAM_ORDER]

    if norm_params is None:
        gf = jnp.ones((1, D), f32)
        bfn = jnp.zeros((1, D), f32)
        apply_final_norm = False
    else:
        gf, bfn = norm_params
        gf = jnp.asarray(gf, f32).reshape(1, D)
        bfn = jnp.asarray(bfn, f32).reshape(1, D)
        apply_final_norm = True

    kernel = functools.partial(encoder_kernel, seq_len=S,
                               apply_final_norm=apply_final_norm,
                               exact_softmax=exact_softmax)

    # Single fused pallas_call: whole batch flattened to one (B*S, D) block,
    # no grid (per-step overhead removed); all-layer weight stack + masks +
    # activations total well under 1 MiB -> far below every generation's VMEM.
    out2d = pl.pallas_call(
        kernel,
        out_shape=jax.ShapeDtypeStruct((B * S, D), src.dtype),
        compiler_params=pltpu.CompilerParams(
            vmem_limit_bytes=32 * 1024 * 1024),
    )(src.reshape(B * S, D), pos.reshape(B * S, D), *args, gf, bfn)
    return out2d.reshape(B, S, D)


def init_layer_params(key):
    ks = jax.random.split(key, 5)
    s = 0.05
    f32 = jnp.float32
    return {
        "wqk": jax.random.normal(ks[0], (D_MODEL, 2 * D_MODEL), f32) * s,  # [Wq | Wk]
        "bqk": jnp.zeros((1, 2 * D_MODEL), f32),
        "wv":  jax.random.normal(ks[1], (D_MODEL, D_MODEL), f32) * s,
        "bv":  jnp.zeros((1, D_MODEL), f32),
        "wo":  jax.random.normal(ks[2], (D_MODEL, D_MODEL), f32) * s,
        "bo":  jnp.zeros((1, D_MODEL), f32),
        "g1":  jnp.ones((1, D_MODEL), f32),
        "be1": jnp.zeros((1, D_MODEL), f32),
        "w1":  jax.random.normal(ks[3], (D_MODEL, D_FF), f32) * s,
        "bf1": jnp.zeros((1, D_FF), f32),
        "w2":  jax.random.normal(ks[4], (D_FF, D_MODEL), f32) * s,
        "bf2": jnp.zeros((1, D_MODEL), f32),
        "g2":  jnp.ones((1, D_MODEL), f32),
        "be2": jnp.zeros((1, D_MODEL), f32),
    }


if __name__ == "__main__":
    B, S = 2, 8
    NUM_LAYERS = 2

    key = jax.random.PRNGKey(0)
    k_src, k_pos, k_par = jax.random.split(key, 3)
    src = jax.random.normal(k_src, (B, S, D_MODEL), jnp.float32)
    pos = jax.random.normal(k_pos, (B, S, D_MODEL), jnp.float32)

    layer_keys = jax.random.split(k_par, NUM_LAYERS)
    layer_params = [init_layer_params(k) for k in layer_keys]
    norm_params = (jnp.ones((1, D_MODEL), jnp.float32),
                   jnp.zeros((1, D_MODEL), jnp.float32))

    out = transformer_encoder(src, pos, layer_params, norm_params)
    out = jax.block_until_ready(out)

    assert out.shape == (B, S, D_MODEL), out.shape
    assert bool(jnp.all(jnp.isfinite(out)))
    print("KERNEL_OK")
</pallas_src>

<mosaic_0001>
module attributes {stable_mosaic.version = 11 : i64} {
  func.func @encoder_kernel(%arg0: memref<16x32xf32, #tpu.memory_space<vmem>>, %arg1: memref<16x32xf32, #tpu.memory_space<vmem>>, %arg2: memref<2x32x64xbf16, #tpu.memory_space<vmem>>, %arg3: memref<2x1x64xf32, #tpu.memory_space<vmem>>, %arg4: memref<2x32x32xbf16, #tpu.memory_space<vmem>>, %arg5: memref<2x1x32xf32, #tpu.memory_space<vmem>>, %arg6: memref<2x32x32xbf16, #tpu.memory_space<vmem>>, %arg7: memref<2x1x32xf32, #tpu.memory_space<vmem>>, %arg8: memref<2x1x32xf32, #tpu.memory_space<vmem>>, %arg9: memref<2x1x32xf32, #tpu.memory_space<vmem>>, %arg10: memref<2x32x64xbf16, #tpu.memory_space<vmem>>, %arg11: memref<2x1x64xf32, #tpu.memory_space<vmem>>, %arg12: memref<2x64x32xbf16, #tpu.memory_space<vmem>>, %arg13: memref<2x1x32xf32, #tpu.memory_space<vmem>>, %arg14: memref<2x1x32xf32, #tpu.memory_space<vmem>>, %arg15: memref<2x1x32xf32, #tpu.memory_space<vmem>>, %arg16: memref<1x32xf32, #tpu.memory_space<vmem>>, %arg17: memref<1x32xf32, #tpu.memory_space<vmem>>, %arg18: memref<16x32xf32, #tpu.memory_space<vmem>>) attributes {dimension_semantics = [], scalar_prefetch = 0 : i64, scratch_operands = 0 : i64, tpu.core_type = #tpu.core_type<tc>} {
    %c0 = arith.constant 0 : index
    %c0_0 = arith.constant 0 : index
    %0 = vector.load %arg0[%c0, %c0_0] : memref<16x32xf32, #tpu.memory_space<vmem>>, vector<16x32xf32>
    %c0_1 = arith.constant 0 : index
    %c0_2 = arith.constant 0 : index
    %1 = vector.load %arg1[%c0_1, %c0_2] : memref<16x32xf32, #tpu.memory_space<vmem>>, vector<16x32xf32>
    %2 = tpu.iota {dimensions = array<i32: 0>} : vector<64x32xi32>
    %3 = tpu.iota {dimensions = array<i32: 1>} : vector<64x32xi32>
    %c0_i32 = arith.constant 0 : i32
    %4 = vector.broadcast %c0_i32 : i32 to vector<64x32xi32>
    %5 = arith.cmpi sge, %2, %4 : vector<64x32xi32>
    %c16_i32 = arith.constant 16 : i32
    %6 = vector.broadcast %c16_i32 : i32 to vector<64x32xi32>
    %7 = arith.cmpi slt, %2, %6 : vector<64x32xi32>
    %8 = arith.andi %5, %7 : vector<64x32xi1>
    %c0_i32_3 = arith.constant 0 : i32
    %9 = vector.broadcast %c0_i32_3 : i32 to vector<64x32xi32>
    %10 = arith.cmpi sge, %3, %9 : vector<64x32xi32>
    %11 = arith.andi %8, %10 : vector<64x32xi1>
    %c8_i32 = arith.constant 8 : i32
    %12 = vector.broadcast %c8_i32 : i32 to vector<64x32xi32>
    %13 = arith.cmpi slt, %3, %12 : vector<64x32xi32>
    %14 = arith.andi %11, %13 : vector<64x32xi1>
    %c16_i32_4 = arith.constant 16 : i32
    %15 = vector.broadcast %c16_i32_4 : i32 to vector<64x32xi32>
    %16 = arith.cmpi sge, %2, %15 : vector<64x32xi32>
    %c32_i32 = arith.constant 32 : i32
    %17 = vector.broadcast %c32_i32 : i32 to vector<64x32xi32>
    %18 = arith.cmpi slt, %2, %17 : vector<64x32xi32>
    %19 = arith.andi %16, %18 : vector<64x32xi1>
    %c8_i32_5 = arith.constant 8 : i32
    %20 = vector.broadcast %c8_i32_5 : i32 to vector<64x32xi32>
    %21 = arith.cmpi sge, %3, %20 : vector<64x32xi32>
    %22 = arith.andi %19, %21 : vector<64x32xi1>
    %c16_i32_6 = arith.constant 16 : i32
    %23 = vector.broadcast %c16_i32_6 : i32 to vector<64x32xi32>
    %24 = arith.cmpi slt, %3, %23 : vector<64x32xi32>
    %25 = arith.andi %22, %24 : vector<64x32xi1>
    %26 = arith.ori %14, %25 : vector<64x32xi1>
    %c32_i32_7 = arith.constant 32 : i32
    %27 = vector.broadcast %c32_i32_7 : i32 to vector<64x32xi32>
    %28 = arith.cmpi sge, %2, %27 : vector<64x32xi32>
    %c48_i32 = arith.constant 48 : i32
    %29 = vector.broadcast %c48_i32 : i32 to vector<64x32xi32>
    %30 = arith.cmpi slt, %2, %29 : vector<64x32xi32>
    %31 = arith.andi %28, %30 : vector<64x32xi1>
    %c16_i32_8 = arith.constant 16 : i32
    %32 = vector.broadcast %c16_i32_8 : i32 to vector<64x32xi32>
    %33 = arith.cmpi sge, %3, %32 : vector<64x32xi32>
    %34 = arith.andi %31, %33 : vector<64x32xi1>
    %c24_i32 = arith.constant 24 : i32
    %35 = vector.broadcast %c24_i32 : i32 to vector<64x32xi32>
    %36 = arith.cmpi slt, %3, %35 : vector<64x32xi32>
    %37 = arith.andi %34, %36 : vector<64x32xi1>
    %38 = arith.ori %26, %37 : vector<64x32xi1>
    %c48_i32_9 = arith.constant 48 : i32
    %39 = vector.broadcast %c48_i32_9 : i32 to vector<64x32xi32>
    %40 = arith.cmpi sge, %2, %39 : vector<64x32xi32>
    %c64_i32 = arith.constant 64 : i32
    %41 = vector.broadcast %c64_i32 : i32 to vector<64x32xi32>
    %42 = arith.cmpi slt, %2, %41 : vector<64x32xi32>
    %43 = arith.andi %40, %42 : vector<64x32xi1>
    %c24_i32_10 = arith.constant 24 : i32
    %44 = vector.broadcast %c24_i32_10 : i32 to vector<64x32xi32>
    %45 = arith.cmpi sge, %3, %44 : vector<64x32xi32>
    %46 = arith.andi %43, %45 : vector<64x32xi1>
    %c32_i32_11 = arith.constant 32 : i32
    %47 = vector.broadcast %c32_i32_11 : i32 to vector<64x32xi32>
    %48 = arith.cmpi slt, %3, %47 : vector<64x32xi32>
    %49 = arith.andi %46, %48 : vector<64x32xi1>
    %50 = arith.ori %38, %49 : vector<64x32xi1>
    %51 = arith.extui %50 : vector<64x32xi1> to vector<64x32xi32>
    %52 = arith.sitofp %51 : vector<64x32xi32> to vector<64x32xf32>
    %53 = tpu.iota {dimensions = array<i32: 0>} : vector<64x16xi32>
    %54 = tpu.iota {dimensions = array<i32: 1>} : vector<64x16xi32>
    %c0_i32_12 = arith.constant 0 : i32
    %55 = vector.broadcast %c0_i32_12 : i32 to vector<64x16xi32>
    %56 = arith.cmpi sge, %53, %55 : vector<64x16xi32>
    %c8_i32_13 = arith.constant 8 : i32
    %57 = vector.broadcast %c8_i32_13 : i32 to vector<64x16xi32>
    %58 = arith.cmpi slt, %53, %57 : vector<64x16xi32>
    %59 = arith.andi %56, %58 : vector<64x16xi1>
    %c0_i32_14 = arith.constant 0 : i32
    %60 = vector.broadcast %c0_i32_14 : i32 to vector<64x16xi32>
    %61 = arith.cmpi sge, %54, %60 : vector<64x16xi32>
    %62 = arith.andi %59, %61 : vector<64x16xi1>
    %c8_i32_15 = arith.constant 8 : i32
    %63 = vector.broadcast %c8_i32_15 : i32 to vector<64x16xi32>
    %64 = arith.cmpi slt, %54, %63 : vector<64x16xi32>
    %65 = arith.andi %62, %64 : vector<64x16xi1>
    %c8_i32_16 = arith.constant 8 : i32
    %66 = vector.broadcast %c8_i32_16 : i32 to vector<64x16xi32>
    %67 = arith.cmpi sge, %53, %66 : vector<64x16xi32>
    %c16_i32_17 = arith.constant 16 : i32
    %68 = vector.broadcast %c16_i32_17 : i32 to vector<64x16xi32>
    %69 = arith.cmpi slt, %53, %68 : vector<64x16xi32>
    %70 = arith.andi %67, %69 : vector<64x16xi1>
    %c8_i32_18 = arith.constant 8 : i32
    %71 = vector.broadcast %c8_i32_18 : i32 to vector<64x16xi32>
    %72 = arith.cmpi sge, %54, %71 : vector<64x16xi32>
    %73 = arith.andi %70, %72 : vector<64x16xi1>
    %c16_i32_19 = arith.constant 16 : i32
    %74 = vector.broadcast %c16_i32_19 : i32 to vector<64x16xi32>
    %75 = arith.cmpi slt, %54, %74 : vector<64x16xi32>
    %76 = arith.andi %73, %75 : vector<64x16xi1>
    %77 = arith.ori %65, %76 : vector<64x16xi1>
    %c16_i32_20 = arith.constant 16 : i32
    %78 = vector.broadcast %c16_i32_20 : i32 to vector<64x16xi32>
    %79 = arith.cmpi sge, %53, %78 : vector<64x16xi32>
    %c24_i32_21 = arith.constant 24 : i32
    %80 = vector.broadcast %c24_i32_21 : i32 to vector<64x16xi32>
    %81 = arith.cmpi slt, %53, %80 : vector<64x16xi32>
    %82 = arith.andi %79, %81 : vector<64x16xi1>
    %c0_i32_22 = arith.constant 0 : i32
    %83 = vector.broadcast %c0_i32_22 : i32 to vector<64x16xi32>
    %84 = arith.cmpi sge, %54, %83 : vector<64x16xi32>
    %85 = arith.andi %82, %84 : vector<64x16xi1>
    %c8_i32_23 = arith.constant 8 : i32
    %86 = vector.broadcast %c8_i32_23 : i32 to vector<64x16xi32>
    %87 = arith.cmpi slt, %54, %86 : vector<64x16xi32>
    %88 = arith.andi %85, %87 : vector<64x16xi1>
    %89 = arith.ori %77, %88 : vector<64x16xi1>
    %c24_i32_24 = arith.constant 24 : i32
    %90 = vector.broadcast %c24_i32_24 : i32 to vector<64x16xi32>
    %91 = arith.cmpi sge, %53, %90 : vector<64x16xi32>
    %c32_i32_25 = arith.constant 32 : i32
    %92 = vector.broadcast %c32_i32_25 : i32 to vector<64x16xi32>
    %93 = arith.cmpi slt, %53, %92 : vector<64x16xi32>
    %94 = arith.andi %91, %93 : vector<64x16xi1>
    %c8_i32_26 = arith.constant 8 : i32
    %95 = vector.broadcast %c8_i32_26 : i32 to vector<64x16xi32>
    %96 = arith.cmpi sge, %54, %95 : vector<64x16xi32>
    %97 = arith.andi %94, %96 : vector<64x16xi1>
    %c16_i32_27 = arith.constant 16 : i32
    %98 = vector.broadcast %c16_i32_27 : i32 to vector<64x16xi32>
    %99 = arith.cmpi slt, %54, %98 : vector<64x16xi32>
    %100 = arith.andi %97, %99 : vector<64x16xi1>
    %101 = arith.ori %89, %100 : vector<64x16xi1>
    %c32_i32_28 = arith.constant 32 : i32
    %102 = vector.broadcast %c32_i32_28 : i32 to vector<64x16xi32>
    %103 = arith.cmpi sge, %53, %102 : vector<64x16xi32>
    %c40_i32 = arith.constant 40 : i32
    %104 = vector.broadcast %c40_i32 : i32 to vector<64x16xi32>
    %105 = arith.cmpi slt, %53, %104 : vector<64x16xi32>
    %106 = arith.andi %103, %105 : vector<64x16xi1>
    %c0_i32_29 = arith.constant 0 : i32
    %107 = vector.broadcast %c0_i32_29 : i32 to vector<64x16xi32>
    %108 = arith.cmpi sge, %54, %107 : vector<64x16xi32>
    %109 = arith.andi %106, %108 : vector<64x16xi1>
    %c8_i32_30 = arith.constant 8 : i32
    %110 = vector.broadcast %c8_i32_30 : i32 to vector<64x16xi32>
    %111 = arith.cmpi slt, %54, %110 : vector<64x16xi32>
    %112 = arith.andi %109, %111 : vector<64x16xi1>
    %113 = arith.ori %101, %112 : vector<64x16xi1>
    %c40_i32_31 = arith.constant 40 : i32
    %114 = vector.broadcast %c40_i32_31 : i32 to vector<64x16xi32>
    %115 = arith.cmpi sge, %53, %114 : vector<64x16xi32>
    %c48_i32_32 = arith.constant 48 : i32
    %116 = vector.broadcast %c48_i32_32 : i32 to vector<64x16xi32>
    %117 = arith.cmpi slt, %53, %116 : vector<64x16xi32>
    %118 = arith.andi %115, %117 : vector<64x16xi1>
    %c8_i32_33 = arith.constant 8 : i32
    %119 = vector.broadcast %c8_i32_33 : i32 to vector<64x16xi32>
    %120 = arith.cmpi sge, %54, %119 : vector<64x16xi32>
    %121 = arith.andi %118, %120 : vector<64x16xi1>
    %c16_i32_34 = arith.constant 16 : i32
    %122 = vector.broadcast %c16_i32_34 : i32 to vector<64x16xi32>
    %123 = arith.cmpi slt, %54, %122 : vector<64x16xi32>
    %124 = arith.andi %121, %123 : vector<64x16xi1>
    %125 = arith.ori %113, %124 : vector<64x16xi1>
    %c48_i32_35 = arith.constant 48 : i32
    %126 = vector.broadcast %c48_i32_35 : i32 to vector<64x16xi32>
    %127 = arith.cmpi sge, %53, %126 : vector<64x16xi32>
    %c56_i32 = arith.constant 56 : i32
    %128 = vector.broadcast %c56_i32 : i32 to vector<64x16xi32>
    %129 = arith.cmpi slt, %53, %128 : vector<64x16xi32>
    %130 = arith.andi %127, %129 : vector<64x16xi1>
    %c0_i32_36 = arith.constant 0 : i32
    %131 = vector.broadcast %c0_i32_36 : i32 to vector<64x16xi32>
    %132 = arith.cmpi sge, %54, %131 : vector<64x16xi32>
    %133 = arith.andi %130, %132 : vector<64x16xi1>
    %c8_i32_37 = arith.constant 8 : i32
    %134 = vector.broadcast %c8_i32_37 : i32 to vector<64x16xi32>
    %135 = arith.cmpi slt, %54, %134 : vector<64x16xi32>
    %136 = arith.andi %133, %135 : vector<64x16xi1>
    %137 = arith.ori %125, %136 : vector<64x16xi1>
    %c56_i32_38 = arith.constant 56 : i32
    %138 = vector.broadcast %c56_i32_38 : i32 to vector<64x16xi32>
    %139 = arith.cmpi sge, %53, %138 : vector<64x16xi32>
    %c64_i32_39 = arith.constant 64 : i32
    %140 = vector.broadcast %c64_i32_39 : i32 to vector<64x16xi32>
    %141 = arith.cmpi slt, %53, %140 : vector<64x16xi32>
    %142 = arith.andi %139, %141 : vector<64x16xi1>
    %c8_i32_40 = arith.constant 8 : i32
    %143 = vector.broadcast %c8_i32_40 : i32 to vector<64x16xi32>
    %144 = arith.cmpi sge, %54, %143 : vector<64x16xi32>
    %145 = arith.andi %142, %144 : vector<64x16xi1>
    %c16_i32_41 = arith.constant 16 : i32
    %146 = vector.broadcast %c16_i32_41 : i32 to vector<64x16xi32>
    %147 = arith.cmpi slt, %54, %146 : vector<64x16xi32>
    %148 = arith.andi %145, %147 : vector<64x16xi1>
    %149 = arith.ori %137, %148 : vector<64x16xi1>
    %150 = arith.addf %0, %1 : vector<16x32xf32>
    %151 = arith.truncf %150 : vector<16x32xf32> to vector<16x32xbf16>
    %c0_42 = arith.constant 0 : index
    %c0_43 = arith.constant 0 : index
    %c0_44 = arith.constant 0 : index
    %152 = vector.load %arg2[%c0_42, %c0_43, %c0_44] : memref<2x32x64xbf16, #tpu.memory_space<vmem>>, vector<1x32x64xbf16>
    %153 = vector.shape_cast %152 : vector<1x32x64xbf16> to vector<32x64xbf16>
    %cst = arith.constant dense<0.000000e+00> : vector<16x64xf32>
    %154 = tpu.matmul %151, %153, %cst {dimension_numbers = #tpu.dot_dimension_numbers<[1], [0], [0], [1], [0, 0, 1, 1], [], []>} : vector<16x32xbf16>, vector<32x64xbf16>, vector<16x64xf32> -> vector<16x64xf32>
    %c0_45 = arith.constant 0 : index
    %c0_46 = arith.constant 0 : index
    %c0_47 = arith.constant 0 : index
    %155 = vector.load %arg3[%c0_45, %c0_46, %c0_47] : memref<2x1x64xf32, #tpu.memory_space<vmem>>, vector<1x1x64xf32>
    %156 = vector.shape_cast %155 : vector<1x1x64xf32> to vector<1x64xf32>
    %157 = vector.broadcast %156 : vector<1x64xf32> to vector<16x64xf32>
    %158 = arith.addf %154, %157 : vector<16x64xf32>
    %159 = arith.truncf %0 : vector<16x32xf32> to vector<16x32xbf16>
    %c0_48 = arith.constant 0 : index
    %c0_49 = arith.constant 0 : index
    %c0_50 = arith.constant 0 : index
    %160 = vector.load %arg4[%c0_48, %c0_49, %c0_50] : memref<2x32x32xbf16, #tpu.memory_space<vmem>>, vector<1x32x32xbf16>
    %161 = vector.shape_cast %160 : vector<1x32x32xbf16> to vector<32x32xbf16>
    %cst_51 = arith.constant dense<0.000000e+00> : vector<16x32xf32>
    %162 = tpu.matmul %159, %161, %cst_51 {dimension_numbers = #tpu.dot_dimension_numbers<[1], [0], [0], [1], [0, 0, 1, 1], [], []>} : vector<16x32xbf16>, vector<32x32xbf16>, vector<16x32xf32> -> vector<16x32xf32>
    %c0_52 = arith.constant 0 : index
    %c0_53 = arith.constant 0 : index
    %c0_54 = arith.constant 0 : index
    %163 = vector.load %arg5[%c0_52, %c0_53, %c0_54] : memref<2x1x32xf32, #tpu.memory_space<vmem>>, vector<1x1x32xf32>
    %164 = vector.shape_cast %163 : vector<1x1x32xf32> to vector<1x32xf32>
    %165 = vector.broadcast %164 : vector<1x32xf32> to vector<16x32xf32>
    %166 = arith.addf %162, %165 : vector<16x32xf32>
    %167 = vector.extract_strided_slice %158 {offsets = [0, 0], sizes = [16, 32], strides = [1, 1]} : vector<16x64xf32> to vector<16x32xf32>
    %168 = vector.extract_strided_slice %158 {offsets = [0, 32], sizes = [16, 32], strides = [1, 1]} : vector<16x64xf32> to vector<16x32xf32>
    %169 = tpu.concatenate %167, %167, %167, %167 in 0 : vector<16x32xf32>, vector<16x32xf32>, vector<16x32xf32>, vector<16x32xf32> -> vector<64x32xf32>
    %170 = arith.mulf %169, %52 : vector<64x32xf32>
    %171 = arith.truncf %170 : vector<64x32xf32> to vector<64x32xbf16>
    %172 = arith.truncf %168 : vector<16x32xf32> to vector<16x32xbf16>
    %cst_55 = arith.constant dense<0.000000e+00> : vector<64x16xf32>
    %173 = tpu.matmul %171, %172, %cst_55 {dimension_numbers = #tpu.dot_dimension_numbers<[1], [1], [0], [0], [0, 0, 1, 0], [], []>} : vector<64x32xbf16>, vector<16x32xbf16>, vector<64x16xf32> -> vector<64x16xf32>
    %cst_56 = arith.constant -1.000000e+30 : f32
    %174 = vector.broadcast %cst_56 : f32 to vector<64x16xf32>
    %175 = arith.select %149, %173, %174 : vector<64x16xi1>, vector<64x16xf32>
    %cst_57 = arith.constant dense<0xFF800000> : vector<64xf32>
    %176 = vector.multi_reduction <maximumf>, %175, %cst_57 [1] : vector<64x16xf32> to vector<64xf32>
    %177 = vector.shape_cast %176 : vector<64xf32> to vector<64x1xf32>
    %178 = vector.broadcast %177 : vector<64x1xf32> to vector<64x16xf32>
    %179 = arith.subf %175, %178 : vector<64x16xf32>
    %180 = math.exp %179 : vector<64x16xf32>
    %cst_58 = arith.constant dense<0.000000e+00> : vector<64xf32>
    %181 = vector.multi_reduction <add>, %180, %cst_58 [1] : vector<64x16xf32> to vector<64xf32>
    %182 = vector.shape_cast %181 : vector<64xf32> to vector<64x1xf32>
    %183 = tpu.reciprocal %182 {approx = true} : vector<64x1xf32> -> vector<64x1xf32>
    %184 = vector.broadcast %183 : vector<64x1xf32> to vector<64x16xf32>
    %185 = arith.mulf %180, %184 : vector<64x16xf32>
    %186 = arith.truncf %185 : vector<64x16xf32> to vector<64x16xbf16>
    %187 = arith.truncf %166 : vector<16x32xf32> to vector<16x32xbf16>
    %cst_59 = arith.constant dense<0.000000e+00> : vector<64x32xf32>
    %188 = tpu.matmul %186, %187, %cst_59 {dimension_numbers = #tpu.dot_dimension_numbers<[1], [0], [0], [1], [0, 0, 1, 1], [], []>} : vector<64x16xbf16>, vector<16x32xbf16>, vector<64x32xf32> -> vector<64x32xf32>
    %189 = arith.mulf %188, %52 : vector<64x32xf32>
    %190 = vector.extract_strided_slice %189 {offsets = [0, 0], sizes = [16, 32], strides = [1, 1]} : vector<64x32xf32> to vector<16x32xf32>
    %191 = vector.extract_strided_slice %189 {offsets = [16, 0], sizes = [16, 32], strides = [1, 1]} : vector<64x32xf32> to vector<16x32xf32>
    %192 = arith.addf %190, %191 : vector<16x32xf32>
    %193 = vector.extract_strided_slice %189 {offsets = [32, 0], sizes = [16, 32], strides = [1, 1]} : vector<64x32xf32> to vector<16x32xf32>
    %194 = arith.addf %192, %193 : vector<16x32xf32>
    %195 = vector.extract_strided_slice %189 {offsets = [48, 0], sizes = [16, 32], strides = [1, 1]} : vector<64x32xf32> to vector<16x32xf32>
    %196 = arith.addf %194, %195 : vector<16x32xf32>
    %197 = arith.truncf %196 : vector<16x32xf32> to vector<16x32xbf16>
    %c0_60 = arith.constant 0 : index
    %c0_61 = arith.constant 0 : index
    %c0_62 = arith.constant 0 : index
    %198 = vector.load %arg6[%c0_60, %c0_61, %c0_62] : memref<2x32x32xbf16, #tpu.memory_space<vmem>>, vector<1x32x32xbf16>
    %199 = vector.shape_cast %198 : vector<1x32x32xbf16> to vector<32x32xbf16>
    %cst_63 = arith.constant dense<0.000000e+00> : vector<16x32xf32>
    %200 = tpu.matmul %197, %199, %cst_63 {dimension_numbers = #tpu.dot_dimension_numbers<[1], [0], [0], [1], [0, 0, 1, 1], [], []>} : vector<16x32xbf16>, vector<32x32xbf16>, vector<16x32xf32> -> vector<16x32xf32>
    %c0_64 = arith.constant 0 : index
    %c0_65 = arith.constant 0 : index
    %c0_66 = arith.constant 0 : index
    %201 = vector.load %arg7[%c0_64, %c0_65, %c0_66] : memref<2x1x32xf32, #tpu.memory_space<vmem>>, vector<1x1x32xf32>
    %202 = vector.shape_cast %201 : vector<1x1x32xf32> to vector<1x32xf32>
    %203 = vector.broadcast %202 : vector<1x32xf32> to vector<16x32xf32>
    %204 = arith.addf %200, %203 : vector<16x32xf32>
    %205 = arith.addf %0, %204 : vector<16x32xf32>
    %c0_67 = arith.constant 0 : index
    %c0_68 = arith.constant 0 : index
    %c0_69 = arith.constant 0 : index
    %206 = vector.load %arg8[%c0_67, %c0_68, %c0_69] : memref<2x1x32xf32, #tpu.memory_space<vmem>>, vector<1x1x32xf32>
    %207 = vector.shape_cast %206 : vector<1x1x32xf32> to vector<1x32xf32>
    %c0_70 = arith.constant 0 : index
    %c0_71 = arith.constant 0 : index
    %c0_72 = arith.constant 0 : index
    %208 = vector.load %arg9[%c0_70, %c0_71, %c0_72] : memref<2x1x32xf32, #tpu.memory_space<vmem>>, vector<1x1x32xf32>
    %209 = vector.shape_cast %208 : vector<1x1x32xf32> to vector<1x32xf32>
    %cst_73 = arith.constant dense<0.000000e+00> : vector<16xf32>
    %210 = vector.multi_reduction <add>, %205, %cst_73 [1] : vector<16x32xf32> to vector<16xf32>
    %211 = vector.shape_cast %210 : vector<16xf32> to vector<16x1xf32>
    %cst_74 = arith.constant 3.200000e+01 : f32
    %212 = vector.broadcast %cst_74 : f32 to vector<16x1xf32>
    %213 = arith.divf %211, %212 : vector<16x1xf32>
    %214 = vector.broadcast %213 : vector<16x1xf32> to vector<16x32xf32>
    %215 = arith.subf %205, %214 : vector<16x32xf32>
    %216 = arith.mulf %215, %215 : vector<16x32xf32>
    %cst_75 = arith.constant dense<0.000000e+00> : vector<16xf32>
    %217 = vector.multi_reduction <add>, %216, %cst_75 [1] : vector<16x32xf32> to vector<16xf32>
    %218 = vector.shape_cast %217 : vector<16xf32> to vector<16x1xf32>
    %cst_76 = arith.constant 3.200000e+01 : f32
    %219 = vector.broadcast %cst_76 : f32 to vector<16x1xf32>
    %220 = arith.divf %218, %219 : vector<16x1xf32>
    %221 = vector.broadcast %213 : vector<16x1xf32> to vector<16x32xf32>
    %222 = arith.subf %205, %221 : vector<16x32xf32>
    %cst_77 = arith.constant 9.99999974E-6 : f32
    %223 = vector.broadcast %cst_77 : f32 to vector<16x1xf32>
    %224 = arith.addf %220, %223 : vector<16x1xf32>
    %225 = math.rsqrt %224 : vector<16x1xf32>
    %226 = vector.broadcast %225 : vector<16x1xf32> to vector<16x32xf32>
    %227 = arith.mulf %222, %226 : vector<16x32xf32>
    %228 = vector.broadcast %207 : vector<1x32xf32> to vector<16x32xf32>
    %229 = arith.mulf %227, %228 : vector<16x32xf32>
    %230 = vector.broadcast %209 : vector<1x32xf32> to vector<16x32xf32>
    %231 = arith.addf %229, %230 : vector<16x32xf32>
    %232 = arith.truncf %231 : vector<16x32xf32> to vector<16x32xbf16>
    %c0_78 = arith.constant 0 : index
    %c0_79 = arith.constant 0 : index
    %c0_80 = arith.constant 0 : index
    %233 = vector.load %arg10[%c0_78, %c0_79, %c0_80] : memref<2x32x64xbf16, #tpu.memory_space<vmem>>, vector<1x32x64xbf16>
    %234 = vector.shape_cast %233 : vector<1x32x64xbf16> to vector<32x64xbf16>
    %cst_81 = arith.constant dense<0.000000e+00> : vector<16x64xf32>
    %235 = tpu.matmul %232, %234, %cst_81 {dimension_numbers = #tpu.dot_dimension_numbers<[1], [0], [0], [1], [0, 0, 1, 1], [], []>} : vector<16x32xbf16>, vector<32x64xbf16>, vector<16x64xf32> -> vector<16x64xf32>
    %c0_82 = arith.constant 0 : index
    %c0_83 = arith.constant 0 : index
    %c0_84 = arith.constant 0 : index
    %236 = vector.load %arg11[%c0_82, %c0_83, %c0_84] : memref<2x1x64xf32, #tpu.memory_space<vmem>>, vector<1x1x64xf32>
    %237 = vector.shape_cast %236 : vector<1x1x64xf32> to vector<1x64xf32>
    %238 = vector.broadcast %237 : vector<1x64xf32> to vector<16x64xf32>
    %239 = arith.addf %235, %238 : vector<16x64xf32>
    %cst_85 = arith.constant 0.000000e+00 : f32
    %240 = vector.broadcast %cst_85 : f32 to vector<16x64xf32>
    %241 = arith.maximumf %239, %240 : vector<16x64xf32>
    %242 = arith.truncf %241 : vector<16x64xf32> to vector<16x64xbf16>
    %c0_86 = arith.constant 0 : index
    %c0_87 = arith.constant 0 : index
    %c0_88 = arith.constant 0 : index
    %243 = vector.load %arg12[%c0_86, %c0_87, %c0_88] : memref<2x64x32xbf16, #tpu.memory_space<vmem>>, vector<1x64x32xbf16>
    %244 = vector.shape_cast %243 : vector<1x64x32xbf16> to vector<64x32xbf16>
    %cst_89 = arith.constant dense<0.000000e+00> : vector<16x32xf32>
    %245 = tpu.matmul %242, %244, %cst_89 {dimension_numbers = #tpu.dot_dimension_numbers<[1], [0], [0], [1], [0, 0, 1, 1], [], []>} : vector<16x64xbf16>, vector<64x32xbf16>, vector<16x32xf32> -> vector<16x32xf32>
    %c0_90 = arith.constant 0 : index
    %c0_91 = arith.constant 0 : index
    %c0_92 = arith.constant 0 : index
    %246 = vector.load %arg13[%c0_90, %c0_91, %c0_92] : memref<2x1x32xf32, #tpu.memory_space<vmem>>, vector<1x1x32xf32>
    %247 = vector.shape_cast %246 : vector<1x1x32xf32> to vector<1x32xf32>
    %248 = vector.broadcast %247 : vector<1x32xf32> to vector<16x32xf32>
    %249 = arith.addf %245, %248 : vector<16x32xf32>
    %250 = arith.addf %231, %249 : vector<16x32xf32>
    %c0_93 = arith.constant 0 : index
    %c0_94 = arith.constant 0 : index
    %c0_95 = arith.constant 0 : index
    %251 = vector.load %arg14[%c0_93, %c0_94, %c0_95] : memref<2x1x32xf32, #tpu.memory_space<vmem>>, vector<1x1x32xf32>
    %252 = vector.shape_cast %251 : vector<1x1x32xf32> to vector<1x32xf32>
    %c0_96 = arith.constant 0 : index
    %c0_97 = arith.constant 0 : index
    %c0_98 = arith.constant 0 : index
    %253 = vector.load %arg15[%c0_96, %c0_97, %c0_98] : memref<2x1x32xf32, #tpu.memory_space<vmem>>, vector<1x1x32xf32>
    %254 = vector.shape_cast %253 : vector<1x1x32xf32> to vector<1x32xf32>
    %cst_99 = arith.constant dense<0.000000e+00> : vector<16xf32>
    %255 = vector.multi_reduction <add>, %250, %cst_99 [1] : vector<16x32xf32> to vector<16xf32>
    %256 = vector.shape_cast %255 : vector<16xf32> to vector<16x1xf32>
    %cst_100 = arith.constant 3.200000e+01 : f32
    %257 = vector.broadcast %cst_100 : f32 to vector<16x1xf32>
    %258 = arith.divf %256, %257 : vector<16x1xf32>
    %259 = vector.broadcast %258 : vector<16x1xf32> to vector<16x32xf32>
    %260 = arith.subf %250, %259 : vector<16x32xf32>
    %261 = arith.mulf %260, %260 : vector<16x32xf32>
    %cst_101 = arith.constant dense<0.000000e+00> : vector<16xf32>
    %262 = vector.multi_reduction <add>, %261, %cst_101 [1] : vector<16x32xf32> to vector<16xf32>
    %263 = vector.shape_cast %262 : vector<16xf32> to vector<16x1xf32>
    %cst_102 = arith.constant 3.200000e+01 : f32
    %264 = vector.broadcast %cst_102 : f32 to vector<16x1xf32>
    %265 = arith.divf %263, %264 : vector<16x1xf32>
    %266 = vector.broadcast %258 : vector<16x1xf32> to vector<16x32xf32>
    %267 = arith.subf %250, %266 : vector<16x32xf32>
    %cst_103 = arith.constant 9.99999974E-6 : f32
    %268 = vector.broadcast %cst_103 : f32 to vector<16x1xf32>
    %269 = arith.addf %265, %268 : vector<16x1xf32>
    %270 = math.rsqrt %269 : vector<16x1xf32>
    %271 = vector.broadcast %270 : vector<16x1xf32> to vector<16x32xf32>
    %272 = arith.mulf %267, %271 : vector<16x32xf32>
    %273 = vector.broadcast %252 : vector<1x32xf32> to vector<16x32xf32>
    %274 = arith.mulf %272, %273 : vector<16x32xf32>
    %275 = vector.broadcast %254 : vector<1x32xf32> to vector<16x32xf32>
    %276 = arith.addf %274, %275 : vector<16x32xf32>
    %277 = arith.addf %276, %1 : vector<16x32xf32>
    %278 = arith.truncf %277 : vector<16x32xf32> to vector<16x32xbf16>
    %c1 = arith.constant 1 : index
    %c0_104 = arith.constant 0 : index
    %c0_105 = arith.constant 0 : index
    %279 = vector.load %arg2[%c1, %c0_104, %c0_105] : memref<2x32x64xbf16, #tpu.memory_space<vmem>>, vector<1x32x64xbf16>
    %280 = vector.shape_cast %279 : vector<1x32x64xbf16> to vector<32x64xbf16>
    %cst_106 = arith.constant dense<0.000000e+00> : vector<16x64xf32>
    %281 = tpu.matmul %278, %280, %cst_106 {dimension_numbers = #tpu.dot_dimension_numbers<[1], [0], [0], [1], [0, 0, 1, 1], [], []>} : vector<16x32xbf16>, vector<32x64xbf16>, vector<16x64xf32> -> vector<16x64xf32>
    %c1_107 = arith.constant 1 : index
    %c0_108 = arith.constant 0 : index
    %c0_109 = arith.constant 0 : index
    %282 = vector.load %arg3[%c1_107, %c0_108, %c0_109] : memref<2x1x64xf32, #tpu.memory_space<vmem>>, vector<1x1x64xf32>
    %283 = vector.shape_cast %282 : vector<1x1x64xf32> to vector<1x64xf32>
    %284 = vector.broadcast %283 : vector<1x64xf32> to vector<16x64xf32>
    %285 = arith.addf %281, %284 : vector<16x64xf32>
    %286 = arith.truncf %276 : vector<16x32xf32> to vector<16x32xbf16>
    %c1_110 = arith.constant 1 : index
    %c0_111 = arith.constant 0 : index
    %c0_112 = arith.constant 0 : index
    %287 = vector.load %arg4[%c1_110, %c0_111, %c0_112] : memref<2x32x32xbf16, #tpu.memory_space<vmem>>, vector<1x32x32xbf16>
    %288 = vector.shape_cast %287 : vector<1x32x32xbf16> to vector<32x32xbf16>
    %cst_113 = arith.constant dense<0.000000e+00> : vector<16x32xf32>
    %289 = tpu.matmul %286, %288, %cst_113 {dimension_numbers = #tpu.dot_dimension_numbers<[1], [0], [0], [1], [0, 0, 1, 1], [], []>} : vector<16x32xbf16>, vector<32x32xbf16>, vector<16x32xf32> -> vector<16x32xf32>
    %c1_114 = arith.constant 1 : index
    %c0_115 = arith.constant 0 : index
    %c0_116 = arith.constant 0 : index
    %290 = vector.load %arg5[%c1_114, %c0_115, %c0_116] : memref<2x1x32xf32, #tpu.memory_space<vmem>>, vector<1x1x32xf32>
    %291 = vector.shape_cast %290 : vector<1x1x32xf32> to vector<1x32xf32>
    %292 = vector.broadcast %291 : vector<1x32xf32> to vector<16x32xf32>
    %293 = arith.addf %289, %292 : vector<16x32xf32>
    %294 = vector.extract_strided_slice %285 {offsets = [0, 0], sizes = [16, 32], strides = [1, 1]} : vector<16x64xf32> to vector<16x32xf32>
    %295 = vector.extract_strided_slice %285 {offsets = [0, 32], sizes = [16, 32], strides = [1, 1]} : vector<16x64xf32> to vector<16x32xf32>
    %296 = tpu.concatenate %294, %294, %294, %294 in 0 : vector<16x32xf32>, vector<16x32xf32>, vector<16x32xf32>, vector<16x32xf32> -> vector<64x32xf32>
    %297 = arith.mulf %296, %52 : vector<64x32xf32>
    %298 = arith.truncf %297 : vector<64x32xf32> to vector<64x32xbf16>
    %299 = arith.truncf %295 : vector<16x32xf32> to vector<16x32xbf16>
    %cst_117 = arith.constant dense<0.000000e+00> : vector<64x16xf32>
    %300 = tpu.matmul %298, %299, %cst_117 {dimension_numbers = #tpu.dot_dimension_numbers<[1], [1], [0], [0], [0, 0, 1, 0], [], []>} : vector<64x32xbf16>, vector<16x32xbf16>, vector<64x16xf32> -> vector<64x16xf32>
    %cst_118 = arith.constant -1.000000e+30 : f32
    %301 = vector.broadcast %cst_118 : f32 to vector<64x16xf32>
    %302 = arith.select %149, %300, %301 : vector<64x16xi1>, vector<64x16xf32>
    %cst_119 = arith.constant dense<0xFF800000> : vector<64xf32>
    %303 = vector.multi_reduction <maximumf>, %302, %cst_119 [1] : vector<64x16xf32> to vector<64xf32>
    %304 = vector.shape_cast %303 : vector<64xf32> to vector<64x1xf32>
    %305 = vector.broadcast %304 : vector<64x1xf32> to vector<64x16xf32>
    %306 = arith.subf %302, %305 : vector<64x16xf32>
    %307 = math.exp %306 : vector<64x16xf32>
    %cst_120 = arith.constant dense<0.000000e+00> : vector<64xf32>
    %308 = vector.multi_reduction <add>, %307, %cst_120 [1] : vector<64x16xf32> to vector<64xf32>
    %309 = vector.shape_cast %308 : vector<64xf32> to vector<64x1xf32>
    %310 = tpu.reciprocal %309 {approx = true} : vector<64x1xf32> -> vector<64x1xf32>
    %311 = vector.broadcast %310 : vector<64x1xf32> to vector<64x16xf32>
    %312 = arith.mulf %307, %311 : vector<64x16xf32>
    %313 = arith.truncf %312 : vector<64x16xf32> to vector<64x16xbf16>
    %314 = arith.truncf %293 : vector<16x32xf32> to vector<16x32xbf16>
    %cst_121 = arith.constant dense<0.000000e+00> : vector<64x32xf32>
    %315 = tpu.matmul %313, %314, %cst_121 {dimension_numbers = #tpu.dot_dimension_numbers<[1], [0], [0], [1], [0, 0, 1, 1], [], []>} : vector<64x16xbf16>, vector<16x32xbf16>, vector<64x32xf32> -> vector<64x32xf32>
    %316 = arith.mulf %315, %52 : vector<64x32xf32>
    %317 = vector.extract_strided_slice %316 {offsets = [0, 0], sizes = [16, 32], strides = [1, 1]} : vector<64x32xf32> to vector<16x32xf32>
    %318 = vector.extract_strided_slice %316 {offsets = [16, 0], sizes = [16, 32], strides = [1, 1]} : vector<64x32xf32> to vector<16x32xf32>
    %319 = arith.addf %317, %318 : vector<16x32xf32>
    %320 = vector.extract_strided_slice %316 {offsets = [32, 0], sizes = [16, 32], strides = [1, 1]} : vector<64x32xf32> to vector<16x32xf32>
    %321 = arith.addf %319, %320 : vector<16x32xf32>
    %322 = vector.extract_strided_slice %316 {offsets = [48, 0], sizes = [16, 32], strides = [1, 1]} : vector<64x32xf32> to vector<16x32xf32>
    %323 = arith.addf %321, %322 : vector<16x32xf32>
    %324 = arith.truncf %323 : vector<16x32xf32> to vector<16x32xbf16>
    %c1_122 = arith.constant 1 : index
    %c0_123 = arith.constant 0 : index
    %c0_124 = arith.constant 0 : index
    %325 = vector.load %arg6[%c1_122, %c0_123, %c0_124] : memref<2x32x32xbf16, #tpu.memory_space<vmem>>, vector<1x32x32xbf16>
    %326 = vector.shape_cast %325 : vector<1x32x32xbf16> to vector<32x32xbf16>
    %cst_125 = arith.constant dense<0.000000e+00> : vector<16x32xf32>
    %327 = tpu.matmul %324, %326, %cst_125 {dimension_numbers = #tpu.dot_dimension_numbers<[1], [0], [0], [1], [0, 0, 1, 1], [], []>} : vector<16x32xbf16>, vector<32x32xbf16>, vector<16x32xf32> -> vector<16x32xf32>
    %c1_126 = arith.constant 1 : index
    %c0_127 = arith.constant 0 : index
    %c0_128 = arith.constant 0 : index
    %328 = vector.load %arg7[%c1_126, %c0_127, %c0_128] : memref<2x1x32xf32, #tpu.memory_space<vmem>>, vector<1x1x32xf32>
    %329 = vector.shape_cast %328 : vector<1x1x32xf32> to vector<1x32xf32>
    %330 = vector.broadcast %329 : vector<1x32xf32> to vector<16x32xf32>
    %331 = arith.addf %327, %330 : vector<16x32xf32>
    %332 = arith.addf %276, %331 : vector<16x32xf32>
    %c1_129 = arith.constant 1 : index
    %c0_130 = arith.constant 0 : index
    %c0_131 = arith.constant 0 : index
    %333 = vector.load %arg8[%c1_129, %c0_130, %c0_131] : memref<2x1x32xf32, #tpu.memory_space<vmem>>, vector<1x1x32xf32>
    %334 = vector.shape_cast %333 : vector<1x1x32xf32> to vector<1x32xf32>
    %c1_132 = arith.constant 1 : index
    %c0_133 = arith.constant 0 : index
    %c0_134 = arith.constant 0 : index
    %335 = vector.load %arg9[%c1_132, %c0_133, %c0_134] : memref<2x1x32xf32, #tpu.memory_space<vmem>>, vector<1x1x32xf32>
    %336 = vector.shape_cast %335 : vector<1x1x32xf32> to vector<1x32xf32>
    %cst_135 = arith.constant dense<0.000000e+00> : vector<16xf32>
    %337 = vector.multi_reduction <add>, %332, %cst_135 [1] : vector<16x32xf32> to vector<16xf32>
    %338 = vector.shape_cast %337 : vector<16xf32> to vector<16x1xf32>
    %cst_136 = arith.constant 3.200000e+01 : f32
    %339 = vector.broadcast %cst_136 : f32 to vector<16x1xf32>
    %340 = arith.divf %338, %339 : vector<16x1xf32>
    %341 = vector.broadcast %340 : vector<16x1xf32> to vector<16x32xf32>
    %342 = arith.subf %332, %341 : vector<16x32xf32>
    %343 = arith.mulf %342, %342 : vector<16x32xf32>
    %cst_137 = arith.constant dense<0.000000e+00> : vector<16xf32>
    %344 = vector.multi_reduction <add>, %343, %cst_137 [1] : vector<16x32xf32> to vector<16xf32>
    %345 = vector.shape_cast %344 : vector<16xf32> to vector<16x1xf32>
    %cst_138 = arith.constant 3.200000e+01 : f32
    %346 = vector.broadcast %cst_138 : f32 to vector<16x1xf32>
    %347 = arith.divf %345, %346 : vector<16x1xf32>
    %348 = vector.broadcast %340 : vector<16x1xf32> to vector<16x32xf32>
    %349 = arith.subf %332, %348 : vector<16x32xf32>
    %cst_139 = arith.constant 9.99999974E-6 : f32
    %350 = vector.broadcast %cst_139 : f32 to vector<16x1xf32>
    %351 = arith.addf %347, %350 : vector<16x1xf32>
    %352 = math.rsqrt %351 : vector<16x1xf32>
    %353 = vector.broadcast %352 : vector<16x1xf32> to vector<16x32xf32>
    %354 = arith.mulf %349, %353 : vector<16x32xf32>
    %355 = vector.broadcast %334 : vector<1x32xf32> to vector<16x32xf32>
    %356 = arith.mulf %354, %355 : vector<16x32xf32>
    %357 = vector.broadcast %336 : vector<1x32xf32> to vector<16x32xf32>
    %358 = arith.addf %356, %357 : vector<16x32xf32>
    %359 = arith.truncf %358 : vector<16x32xf32> to vector<16x32xbf16>
    %c1_140 = arith.constant 1 : index
    %c0_141 = arith.constant 0 : index
    %c0_142 = arith.constant 0 : index
    %360 = vector.load %arg10[%c1_140, %c0_141, %c0_142] : memref<2x32x64xbf16, #tpu.memory_space<vmem>>, vector<1x32x64xbf16>
    %361 = vector.shape_cast %360 : vector<1x32x64xbf16> to vector<32x64xbf16>
    %cst_143 = arith.constant dense<0.000000e+00> : vector<16x64xf32>
    %362 = tpu.matmul %359, %361, %cst_143 {dimension_numbers = #tpu.dot_dimension_numbers<[1], [0], [0], [1], [0, 0, 1, 1], [], []>} : vector<16x32xbf16>, vector<32x64xbf16>, vector<16x64xf32> -> vector<16x64xf32>
    %c1_144 = arith.constant 1 : index
    %c0_145 = arith.constant 0 : index
    %c0_146 = arith.constant 0 : index
    %363 = vector.load %arg11[%c1_144, %c0_145, %c0_146] : memref<2x1x64xf32, #tpu.memory_space<vmem>>, vector<1x1x64xf32>
    %364 = vector.shape_cast %363 : vector<1x1x64xf32> to vector<1x64xf32>
    %365 = vector.broadcast %364 : vector<1x64xf32> to vector<16x64xf32>
    %366 = arith.addf %362, %365 : vector<16x64xf32>
    %cst_147 = arith.constant 0.000000e+00 : f32
    %367 = vector.broadcast %cst_147 : f32 to vector<16x64xf32>
    %368 = arith.maximumf %366, %367 : vector<16x64xf32>
    %369 = arith.truncf %368 : vector<16x64xf32> to vector<16x64xbf16>
    %c1_148 = arith.constant 1 : index
    %c0_149 = arith.constant 0 : index
    %c0_150 = arith.constant 0 : index
    %370 = vector.load %arg12[%c1_148, %c0_149, %c0_150] : memref<2x64x32xbf16, #tpu.memory_space<vmem>>, vector<1x64x32xbf16>
    %371 = vector.shape_cast %370 : vector<1x64x32xbf16> to vector<64x32xbf16>
    %cst_151 = arith.constant dense<0.000000e+00> : vector<16x32xf32>
    %372 = tpu.matmul %369, %371, %cst_151 {dimension_numbers = #tpu.dot_dimension_numbers<[1], [0], [0], [1], [0, 0, 1, 1], [], []>} : vector<16x64xbf16>, vector<64x32xbf16>, vector<16x32xf32> -> vector<16x32xf32>
    %c1_152 = arith.constant 1 : index
    %c0_153 = arith.constant 0 : index
    %c0_154 = arith.constant 0 : index
    %373 = vector.load %arg13[%c1_152, %c0_153, %c0_154] : memref<2x1x32xf32, #tpu.memory_space<vmem>>, vector<1x1x32xf32>
    %374 = vector.shape_cast %373 : vector<1x1x32xf32> to vector<1x32xf32>
    %375 = vector.broadcast %374 : vector<1x32xf32> to vector<16x32xf32>
    %376 = arith.addf %372, %375 : vector<16x32xf32>
    %377 = arith.addf %358, %376 : vector<16x32xf32>
    %c1_155 = arith.constant 1 : index
    %c0_156 = arith.constant 0 : index
    %c0_157 = arith.constant 0 : index
    %378 = vector.load %arg14[%c1_155, %c0_156, %c0_157] : memref<2x1x32xf32, #tpu.memory_space<vmem>>, vector<1x1x32xf32>
    %379 = vector.shape_cast %378 : vector<1x1x32xf32> to vector<1x32xf32>
    %c1_158 = arith.constant 1 : index
    %c0_159 = arith.constant 0 : index
    %c0_160 = arith.constant 0 : index
    %380 = vector.load %arg15[%c1_158, %c0_159, %c0_160] : memref<2x1x32xf32, #tpu.memory_space<vmem>>, vector<1x1x32xf32>
    %381 = vector.shape_cast %380 : vector<1x1x32xf32> to vector<1x32xf32>
    %cst_161 = arith.constant dense<0.000000e+00> : vector<16xf32>
    %382 = vector.multi_reduction <add>, %377, %cst_161 [1] : vector<16x32xf32> to vector<16xf32>
    %383 = vector.shape_cast %382 : vector<16xf32> to vector<16x1xf32>
    %cst_162 = arith.constant 3.200000e+01 : f32
    %384 = vector.broadcast %cst_162 : f32 to vector<16x1xf32>
    %385 = arith.divf %383, %384 : vector<16x1xf32>
    %386 = vector.broadcast %385 : vector<16x1xf32> to vector<16x32xf32>
    %387 = arith.subf %377, %386 : vector<16x32xf32>
    %388 = arith.mulf %387, %387 : vector<16x32xf32>
    %cst_163 = arith.constant dense<0.000000e+00> : vector<16xf32>
    %389 = vector.multi_reduction <add>, %388, %cst_163 [1] : vector<16x32xf32> to vector<16xf32>
    %390 = vector.shape_cast %389 : vector<16xf32> to vector<16x1xf32>
    %cst_164 = arith.constant 3.200000e+01 : f32
    %391 = vector.broadcast %cst_164 : f32 to vector<16x1xf32>
    %392 = arith.divf %390, %391 : vector<16x1xf32>
    %393 = vector.broadcast %385 : vector<16x1xf32> to vector<16x32xf32>
    %394 = arith.subf %377, %393 : vector<16x32xf32>
    %cst_165 = arith.constant 9.99999974E-6 : f32
    %395 = vector.broadcast %cst_165 : f32 to vector<16x1xf32>
    %396 = arith.addf %392, %395 : vector<16x1xf32>
    %397 = math.rsqrt %396 : vector<16x1xf32>
    %398 = vector.broadcast %397 : vector<16x1xf32> to vector<16x32xf32>
    %399 = arith.mulf %394, %398 : vector<16x32xf32>
    %400 = vector.broadcast %379 : vector<1x32xf32> to vector<16x32xf32>
    %401 = arith.mulf %399, %400 : vector<16x32xf32>
    %402 = vector.broadcast %381 : vector<1x32xf32> to vector<16x32xf32>
    %403 = arith.addf %401, %402 : vector<16x32xf32>
    %c0_166 = arith.constant 0 : index
    %c0_167 = arith.constant 0 : index
    %404 = vector.load %arg16[%c0_166, %c0_167] : memref<1x32xf32, #tpu.memory_space<vmem>>, vector<1x32xf32>
    %c0_168 = arith.constant 0 : index
    %c0_169 = arith.constant 0 : index
    %405 = vector.load %arg17[%c0_168, %c0_169] : memref<1x32xf32, #tpu.memory_space<vmem>>, vector<1x32xf32>
    %cst_170 = arith.constant dense<0.000000e+00> : vector<16xf32>
    %406 = vector.multi_reduction <add>, %403, %cst_170 [1] : vector<16x32xf32> to vector<16xf32>
    %407 = vector.shape_cast %406 : vector<16xf32> to vector<16x1xf32>
    %cst_171 = arith.constant 3.200000e+01 : f32
    %408 = vector.broadcast %cst_171 : f32 to vector<16x1xf32>
    %409 = arith.divf %407, %408 : vector<16x1xf32>
    %410 = vector.broadcast %409 : vector<16x1xf32> to vector<16x32xf32>
    %411 = arith.subf %403, %410 : vector<16x32xf32>
    %412 = arith.mulf %411, %411 : vector<16x32xf32>
    %cst_172 = arith.constant dense<0.000000e+00> : vector<16xf32>
    %413 = vector.multi_reduction <add>, %412, %cst_172 [1] : vector<16x32xf32> to vector<16xf32>
    %414 = vector.shape_cast %413 : vector<16xf32> to vector<16x1xf32>
    %cst_173 = arith.constant 3.200000e+01 : f32
    %415 = vector.broadcast %cst_173 : f32 to vector<16x1xf32>
    %416 = arith.divf %414, %415 : vector<16x1xf32>
    %417 = vector.broadcast %409 : vector<16x1xf32> to vector<16x32xf32>
    %418 = arith.subf %403, %417 : vector<16x32xf32>
    %cst_174 = arith.constant 9.99999974E-6 : f32
    %419 = vector.broadcast %cst_174 : f32 to vector<16x1xf32>
    %420 = arith.addf %416, %419 : vector<16x1xf32>
    %421 = math.rsqrt %420 : vector<16x1xf32>
    %422 = vector.broadcast %421 : vector<16x1xf32> to vector<16x32xf32>
    %423 = arith.mulf %418, %422 : vector<16x32xf32>
    %424 = vector.broadcast %404 : vector<1x32xf32> to vector<16x32xf32>
    %425 = arith.mulf %423, %424 : vector<16x32xf32>
    %426 = vector.broadcast %405 : vector<1x32xf32> to vector<16x32xf32>
    %427 = arith.addf %425, %426 : vector<16x32xf32>
    %c0_175 = arith.constant 0 : index
    %c0_176 = arith.constant 0 : index
    %428 = vector.load %arg18[%c0_175, %c0_176] : memref<16x32xf32, #tpu.memory_space<vmem>>, vector<16x32xf32>
    tpu.vector_store %arg18[%c0_175, %c0_176], %427 {strides = array<i32>} : memref<16x32xf32, #tpu.memory_space<vmem>>, vector<16x32xf32>,
    return
  }
}

</mosaic_0001>

<bundles_post_ra>
// kernel: tpu_custom_call.1
= control target key start
LH: loop header
LB: loop body
LE: loop exit
PB: predicated region body
PF: predicated region fallthrough
CT: control target
= control target key end

     0   :  { %s3197_s0 = inlined_call_operand.hbm [shape: f32[16,32], index: 0, kind: input, shape index: {}]   ;;  %s3198_s1 = inlined_call_operand.hbm [shape: f32[16,32], index: 1, kind: input, shape index: {}]   ;;  %s3199_s2 = inlined_call_operand.vmem [shape: bf16[2,32,64], index: 2, kind: input, shape index: {}]   ;;  %s3200_s3 = inlined_call_operand.vmem [shape: f32[2,1,64], index: 3, kind: input, shape index: {}]   ;;  %s3201_s4 = inlined_call_operand.vmem [shape: bf16[2,32,32], index: 4, kind: input, shape index: {}]   ;;  %s3202_s5 = inlined_call_operand.vmem [shape: f32[2,1,32], index: 5, kind: input, shape index: {}]   ;;  %s3203_s6 = inlined_call_operand.vmem [shape: bf16[2,32,32], index: 6, kind: input, shape index: {}]   ;;  %s3204_s7 = inlined_call_operand.vmem [shape: f32[2,1,32], index: 7, kind: input, shape index: {}]   ;;  %s3205_s8 = inlined_call_operand.vmem [shape: f32[2,1,32], index: 8, kind: input, shape index: {}]   ;;  %s3206_s9 = inlined_call_operand.vmem [shape: f32[2,1,32], index: 9, kind: input, shape index: {}]   ;;  %s3207_s10 = inlined_call_operand.hbm [shape: bf16[2,32,64], index: 10, kind: input, shape index: {}]   ;;  %s3208_s11 = inlined_call_operand.vmem [shape: f32[2,1,64], index: 11, kind: input, shape index: {}]   ;;  %s3209_s12 = inlined_call_operand.vmem [shape: bf16[2,64,32], index: 12, kind: input, shape index: {}]   ;;  %s3210_s13 = inlined_call_operand.vmem [shape: f32[2,1,32], index: 13, kind: input, shape index: {}]   ;;  %s3211_s14 = inlined_call_operand.vmem [shape: f32[2,1,32], index: 14, kind: input, shape index: {}]   ;;  %s3212_s15 = inlined_call_operand.vmem [shape: f32[2,1,32], index: 15, kind: input, shape index: {}]   ;;  %s3213_s16 = inlined_call_operand.vmem [shape: f32[1,32], index: 16, kind: input, shape index: {}]   ;;  %s3214_s17 = inlined_call_operand.vmem [shape: f32[1,32], index: 17, kind: input, shape index: {}]   ;;  %s3215_s18 = inlined_call_operand.hbm [shape: f32[16,32], index: 18, kind: output, shape index: {}]  }
   0x1   :  { %3217 = sst [smem:[#allocation12_spill]] %s3197_s0 }
   0x2   :  { %3218 = sst [smem:[#allocation13_spill]] %s3198_s1 }
   0x3   :  { %3219 = sst [smem:[#allocation14_spill]] %s3199_s2 }
   0x4   :  { %23 = vsyncpa [#allocation3], 0 }
   0x5   :  { %24 = vsyncpa [#allocation6], 0 }
   0x6   :  { %25 = vsyncpa [#allocation4], 0  ;;  %s2695_s27 = smov [#allocation5]   ;;  %s2696_s29 = smov [#allocation2]  }
   0x7   :  { %s43_s28 = sshll.u32 %s2695_s27, 4  ;;  %s31_s30 = sshll.u32 %s2696_s29, 4  ;;  %s44_s28 = int_to_ptr.vmem [resolvable:$true] %s43_s28  ;;  %s32_s30 = int_to_ptr.vmem [resolvable:$true] %s31_s30 }
   0x8   :  { %s2617_s0 = scalar_lea.vmem %s44_s28, 256  ;;  %p2622_p1 = scmp.lt.s32.totalorder %s44_s28, %s44_s28 }
   0x9   :  { %p2618_p0 = scmp.ne.s32.totalorder %s44_s28, %s2617_s0  ;;  %p2623_p2 = scmp.lt.s32.totalorder %s2617_s0, %s2617_s0 }
   0xb   :  { %p2624_p3 = por %p2623_p2, %p2622_p1 }
   0xd   :  { %p2625_p4 = pnand %p2624_p3, %p2618_p0 }
   0xf   :  { %2628 = shalt.err (!%p2625_p4)
}
  0x10   :  { %s2697_s19 = smov 128   ;;  %s2698_s1 = smov 8  }
  0x11   :  { %s3220_s22 = sld [smem:[#allocation13_spill]]  ;;  %s2637_s2 = scalar_lea.vmem %s32_s30, 256 }
  0x12   :  { %p2638_p5 = scmp.ne.s32.totalorder %s32_s30, %s2637_s2  ;;  %p2642_p6 = scmp.lt.s32.totalorder %s32_s30, %s32_s30 }
  0x13   :  { %p2643_p7 = scmp.lt.s32.totalorder %s2637_s2, %s2637_s2 }
  0x15   :  { %p2644_p8 = por %p2643_p7, %p2642_p6 }
  0x17   :  { %49 = dma.hbm_to_vmem [thread:$0]  %s3220_s22, 256, %s44_s28, [#allocation6], %s2697_s19, %s2697_s19, %s2698_s1  }
  0x18   :  { %p2645_p9 = pnand %p2644_p8, %p2638_p5 }
  0x1a   :  { %2648 = shalt.err (!%p2645_p9)
}
  0x1b   :  { %s3221_s25 = sld [smem:[#allocation12_spill]]  ;;  %s2699_s26 = smov [#allocation7]  }
  0x1c   :  { %s71_s27 = sshll.u32 %s2699_s26, 4  ;;  %s72_s27 = int_to_ptr.vmem [resolvable:$true] %s71_s27 }
  0x1d   :  { %s2657_s29 = scalar_lea.vmem %s72_s27, 512  ;;  %p2662_p11 = scmp.lt.s32.totalorder %s72_s27, %s72_s27 }
  0x1e   :  { %p2658_p10 = scmp.ne.s32.totalorder %s72_s27, %s2657_s29  ;;  %p2663_p12 = scmp.lt.s32.totalorder %s2657_s29, %s2657_s29 }
  0x20   :  { %p2664_p13 = por %p2663_p12, %p2662_p11 }
  0x21   :  { %37 = dma.hbm_to_vmem [thread:$0]  %s3221_s25, 256, %s32_s30, [#allocation3], %s2697_s19, %s2697_s19, %s2698_s1  }
  0x22   :  { %p2665_p0 = pnand %p2664_p13, %p2658_p10 }
  0x24   :  { %2668 = shalt.err (!%p2665_p0)
}
  0x25   :  { %s2700_s28 = smov 64   ;;  %s2701_s0 = smov 4  }
  0x26   :  { %77 = dma.hbm_to_vmem [thread:$0]  %s3207_s10, 512, %s72_s27, [#allocation6], %s2700_s28, %s2700_s28, %s2701_s0  }
  0x27   :  { %2689 = dma.done.wait [#allocation3], 256  }
  0x28   :  { %2690 = vsyncadd [#allocation3], 4294967040 }
  0x29   :  { %2691 = dma.done.wait [#allocation6], 768  }
  0x2a   :  { %2692 = vsyncadd [#allocation6], 4294966528  ;;  %v2702_v0 = vmov 0.0   ;;  %vm2703_vm0 = vmmov 0   ;;  %s3222_s2 = sld [smem:[#allocation14_spill]]  ;;  %v2825_v3 = vld [vmem:[#allocation2] sm:$0xff]  ;;  %v115_v10 = vlaneseq }
  0x2b   :  { %2360 = vmatprep.subr.bf16.mxu1 %v2702_v0  ;;  %2364 = vmatprep.mubr.msk.bf16.mxu1 %vm2703_vm0, %v2702_v0  ;;  %v2827_v4 = vld [vmem:[#allocation2 + $0x8] sm:$0xff]  ;;  %v2829_v5 = vld [vmem:[#allocation5] sm:$0xff]  ;;  %v2832_v6 = vld [vmem:[#allocation5 + $0x8] sm:$0xff]  ;;  %vm663_vm1 = vcmask 261120   ;;  %s2704_s26 = smov 96   ;;  %vm880_vm12 = vcmask 130048  }
  0x2c   :  { %v637_v7 = vadd.f32 %v2829_v5, %v2825_v3  ;;  %v638_v8 = vadd.f32 %v2832_v6, %v2827_v4  ;;  %v2842_v11 = vand.u32 127, %v115_v10  ;;  %v2207_v12 = vld [vmem:[%s3200_s3] ss:$0 sm:$0xff]  ;;  %v2503_v39 = vld [vmem:[%s3201_s4 + $0x8] sm:$0xff]   ;;  %v708_v41 = vpack.c.bf16 %v2827_v4, %v2825_v3 }
  0x2d   :  { %v2504_v40 = vld [vmem:[%s3201_s4] sm:$0xff]   ;;  %vm1290_vm13 = vcmask 523264  }
  0x2e   :  { %v639_v9 = vpack.c.bf16 %v638_v8, %v637_v7  ;;  %vm183_vm2 = vcmp.ge.s32.totalorder %v2842_v11, 8  ;;  %vm192_vm3 = vcmp.lt.s32.totalorder %v2842_v11, 16  ;;  %vm233_vm4 = vcmp.ge.s32.totalorder %v2842_v11, 16 }
  0x2f   :  { %vm242_vm5 = vcmp.lt.s32.totalorder %v2842_v11, 24  ;;  %vm2851_vm6 = vmand %vm183_vm2, %vm192_vm3  ;;  %vm283_vm7 = vcmp.ge.s32.totalorder %v2842_v11, 24  ;;  %vm292_vm8 = vcmp.lt.s32.totalorder %v2842_v11, 32  ;;  %vm150_vm9 = vcmp.lt.s32.totalorder %v2842_v11, 8 }
  0x30   :  { %v2501_v1 = vld [vmem:[%s3222_s2 + $0x8] sm:$0xff]   ;;  %v2502_v2 = vld [vmem:[%s3222_s2] sm:$0xff]   ;;  %vm247_vm10 = vmand %vm233_vm4, %vm242_vm5  ;;  %v2861_v17 = vsel %vm150_vm9, 1.0, %v2702_v0  ;;  %v2866_v18 = vsel %vm2851_vm6, 1.0, %v2702_v0 }
  0x31   :  { %2361 = vmatpush3.bf16.msra.mxu1 %v2501_v1  ;;  %vm299_vm11 = vmand %vm283_vm7, %vm292_vm8  ;;  %v2869_v19 = vsel %vm247_vm10, 1.0, %v2702_v0 }
  0x32   :  { %2362 = vmatprep.subr.bf16.mxu1 %v2702_v0  ;;  %v2872_v22 = vsel %vm299_vm11, 1.0, %v2702_v0 }
  0x35   :  { %2363 = vmatpush3.bf16.msra.mxu1 %v2502_v2 }
  0x36   :  { %2368 = vmatprep.subr.bf16.mxu1 %v2702_v0 }
  0x38   :  { %2365 = vmatmul.mubr.msk.bf16.vlgmr.msra.gmra.mxu1 %vm663_vm1, %v639_v9 }
  0x39   :  { %2372 = vmatprep.mubr.msk.bf16.mxu1 %vm2703_vm0, %v2702_v0  ;;  %2369 = vmatpush3.bf16.msra.mxu1 %v2503_v39 }
  0x3a   :  { %2370 = vmatprep.subr.bf16.mxu1 %v2702_v0 }
  0x3d   :  { %2371 = vmatpush3.bf16.msra.mxu1 %v2504_v40 }
  0x40   :  { %2373 = vmatmul.mubr.msk.bf16.vlgmr.msra.gmra.mxu1 %vm663_vm1, %v708_v41 }
  0xf8   :  { %v701_v14 = vpop.f32.mrf.mxu1 }
  0xf9   :  { %v702_v15 = vadd.f32 %v2207_v12, %v701_v14 }
  0xfa   :  { %v2366_v16 = vpop.f32.mrf.mxu1 }
  0xfb   :  { %v776_v24 = vmul.f32 %v2861_v17, %v702_v15  ;;  %v778_v25 = vmul.f32 %v2866_v18, %v702_v15  ;;  %v780_v26 = vmul.f32 %v2869_v19, %v702_v15  ;;  %v782_v31 = vmul.f32 %v2872_v22, %v702_v15 }
  0xfc   :  { %v704_v20 = vpop.f32.mrf.mxu1 }
  0xfd   :  { %v705_v21 = vadd.f32 %v2207_v12, %v704_v20 }
  0xfe   :  { %v2367_v23 = vpop.f32.mrf.mxu1 }
  0xff   :  { %v788_v27 = vpack.c.bf16 %v705_v21, %v702_v15  ;;  %v777_v28 = vmul.f32 %v2861_v17, %v705_v21  ;;  %v779_v29 = vmul.f32 %v2866_v18, %v705_v21  ;;  %v781_v30 = vmul.f32 %v2869_v19, %v705_v21 }
 0x100   :  { %v783_v32 = vmul.f32 %v2872_v22, %v705_v21 }
 0x101   :  { %790 = vrot.lane.b32.xlu0 %v788_v27, %s2704_s26  ;;  %v784_v33 = vpack.c.bf16 %v777_v28, %v776_v24  ;;  %v785_v34 = vpack.c.bf16 %v779_v29, %v778_v25  ;;  %v786_v35 = vpack.c.bf16 %v781_v30, %v780_v26 }
 0x102   :  { %v787_v36 = vpack.c.bf16 %v783_v32, %v782_v31 }
 0x103   :  { %2378 = vmatprep.mubr.msk.bf16.mxu0 %vm663_vm1, %v784_v33 }
 0x173   :  { %v791_v37 = vpop.permute.xlu0 %790 }
 0x174   :  { %2488 = vmatprep.subr.msk.bf16.mxu0 %vm663_vm1, %v791_v37  ;;  %v805_v38 = vsel %vm663_vm1, %v791_v37, 0 }
 0x175   :  { %2377 = vmatpush3.bf16.xpose.msra.mxu0 %v805_v38 }
 0x176   :  { %2396 = vmatprep.subr.bf16.mxu0 %v2702_v0 }
 0x17c   :  { %2379 = vmatmul.mubr.msk.bf16.vlgmr.msra.gmra.mxu0 %vm663_vm1, %v785_v34 }
 0x17d   :  { %2382 = vmatprep.mubr.msk.bf16.mxu0 %vm663_vm1, %v786_v35 }
 0x184   :  { %2383 = vmatmul.mubr.msk.bf16.gmra.mxu0 %vm663_vm1, %v787_v36 }
 0x185   :  { %2400 = vmatprep.mubr.msk.bf16.mxu0 %vm2703_vm0, %v2702_v0 }
 0x23c   :  { %v2380_v42 = vpop.f32.mrf.mxu0 }
 0x23d   :  { %v874_v43 = vsel %vm150_vm9, %v2380_v42, -1e+30 }
 0x23e   :  { %v841_v44 = vpop.f32.mrf.mxu0  ;;  %v887_v45 = vsel %vm880_vm12, %v874_v43, -inf }
 0x23f   :  { %v872_v46 = vsel %vm150_vm9, %v841_v44, -1e+30  ;;  %888 = vmax.xlane.f32.xlu1 %v887_v45 }
 0x240   :  { %v2381_v47 = vpop.f32.mrf.mxu0  ;;  %v881_v48 = vsel %vm880_vm12, %v872_v46, -inf }
 0x241   :  { %v875_v49 = vsel %vm2851_vm6, %v2381_v47, -1e+30  ;;  %882 = vmax.xlane.f32.xlu0 %v881_v48 }
 0x242   :  { %v844_v50 = vpop.f32.mrf.mxu0  ;;  %v890_v51 = vsel %vm880_vm12, %v875_v49, -inf }
 0x243   :  { %v873_v52 = vsel %vm2851_vm6, %v844_v50, -1e+30  ;;  %891 = vmax.xlane.f32.xlu1 %v890_v51 }
 0x244   :  { %v2384_v53 = vpop.f32.mrf.mxu0  ;;  %v884_v55 = vsel %vm880_vm12, %v873_v52, -inf }
 0x245   :  { %v878_v56 = vsel %vm150_vm9, %v2384_v53, -1e+30  ;;  %v769_v53 = vpop.f32.mrf.mxu1 }
 0x246   :  { %v857_v54 = vpop.f32.mrf.mxu0  ;;  %v899_v58 = vsel %vm880_vm12, %v878_v56, -inf }
 0x247   :  { %885 = vmax.xlane.f32.xlu1 %v884_v55  ;;  %v876_v59 = vsel %vm150_vm9, %v857_v54, -1e+30  ;;  %v2374_v55 = vpop.f32.mrf.mxu1 }
 0x248   :  { %v2385_v57 = vpop.f32.mrf.mxu0  ;;  %v893_v61 = vsel %vm880_vm12, %v876_v59, -inf }
 0x249   :  { %v879_v1 = vsel %vm2851_vm6, %v2385_v57, -1e+30  ;;  %v772_v57 = vpop.f32.mrf.mxu1 }
 0x24a   :  { %v860_v60 = vpop.f32.mrf.mxu0  ;;  %v902_v2 = vsel %vm880_vm12, %v879_v1, -inf }
 0x24b   :  { %900 = vmax.xlane.f32.xlu1 %v899_v58  ;;  %v877_v62 = vsel %vm2851_vm6, %v860_v60, -1e+30 }
 0x24c   :  { %v896_v63 = vsel %vm880_vm12, %v877_v62, -inf }
 0x24f   :  { %894 = vmax.xlane.f32.xlu1 %v893_v61 }
 0x253   :  { %897 = vmax.xlane.f32.xlu1 %v896_v63 }
 0x257   :  { %903 = vmax.xlane.f32.xlu1 %v902_v2 }
 0x2c8   :  { %v889_v7 = vpop.xlane.xlu1 %888 }
 0x2c9   :  { %v907_v8 = vsub.f32 %v874_v43, %v889_v7 }
 0x2ca   :  { %v883_v9 = vpop.xlane.xlu0 %882 }
 0x2cb   :  { %v917_v10 = vmul.f32 1.442695, %v907_v8  ;;  %v905_v12 = vsub.f32 %v872_v46, %v883_v9 }
 0x2cc   :  { %v892_v14 = vpop.xlane.xlu1 %891 }
 0x2cd   :  { %2525 = vpow2.f32 %v917_v10  ;;  %v913_v15 = vmul.f32 1.442695, %v905_v12  ;;  %v908_v16 = vsub.f32 %v875_v49, %v892_v14 }
 0x2cf   :  { %2527 = vpow2.f32 %v913_v15  ;;  %v919_v23 = vmul.f32 1.442695, %v908_v16 }
 0x2d0   :  { %v886_v20 = vpop.xlane.xlu1 %885 }
 0x2d1   :  { %v906_v21 = vsub.f32 %v873_v52, %v886_v20  ;;  %v2211_v52 = vld [vmem:[%s3202_s5] ss:$0 sm:$0xff] }
 0x2d2   :  { %v773_v58 = vadd.f32 %v2211_v52, %v772_v57 }
 0x2d3   :  { %v915_v24 = vmul.f32 1.442695, %v906_v21 }
 0x2d4   :  { %v901_v25 = vpop.xlane.xlu1 %900 }
 0x2d5   :  { %2529 = vpow2.f32 %v915_v24  ;;  %v911_v26 = vsub.f32 %v878_v56, %v901_v25  ;;  %v770_v56 = vadd.f32 %v2211_v52, %v769_v53 }
 0x2d6   :  { %2531 = vpow2.f32 %v919_v23 }
 0x2d7   :  { %v925_v30 = vmul.f32 1.442695, %v911_v26  ;;  %v973_v60 = vpack.c.bf16 %v773_v58, %v770_v56 }
 0x2d8   :  { %v895_v27 = vpop.xlane.xlu1 %894 }
 0x2d9   :  { %v909_v28 = vsub.f32 %v876_v59, %v895_v27  ;;  %v2375_v59 = vpop.f32.mrf.mxu1  ;;  %2386 = vmatprep.subr.bf16.mxu1 %v973_v60 }
 0x2da   :  { %v2926_v29 = vpop.eup %2525  ;;  %2387 = vmatpush3.bf16.msra.mxu1 %v973_v60 }
 0x2db   :  { %v921_v31 = vmul.f32 1.442695, %v909_v28  ;;  %v935_v32 = vsel %vm880_vm12, %v2926_v29, 0.0  ;;  %2404 = vmatprep.subr.bf16.mxu1 %v2702_v0 }
 0x2dc   :  { %v2528_v33 = vpop.eup %2527  ;;  %936 = vadd.xlane.f32.xlu0 %v935_v32  ;;  %v898_v34 = vpop.xlane.xlu1 %897 }
 0x2dd   :  { %2533 = vpow2.f32 %v921_v31  ;;  %v910_v35 = vsub.f32 %v877_v62, %v898_v34  ;;  %v929_v36 = vsel %vm880_vm12, %v2528_v33, 0.0 }
 0x2de   :  { %930 = vadd.xlane.f32.xlu1 %v929_v36  ;;  %2535 = vpow2.f32 %v925_v30 }
 0x2df   :  { %v923_v37 = vmul.f32 1.442695, %v910_v35 }
 0x2e0   :  { %v904_v38 = vpop.xlane.xlu1 %903 }
 0x2e1   :  { %2537 = vpow2.f32 %v923_v37  ;;  %v912_v39 = vsub.f32 %v879_v1, %v904_v38  ;;  %v2506_v37 = vld [vmem:[%s3203_s6] sm:$0xff]  }
 0x2e2   :  { %v2530_v40 = vpop.eup %2529 }
 0x2e3   :  { %v927_v41 = vmul.f32 1.442695, %v912_v39  ;;  %v932_v42 = vsel %vm880_vm12, %v2530_v40, 0.0  ;;  %v2532_v43 = vpop.eup %2531 }
 0x2e4   :  { %933 = vadd.xlane.f32.xlu1 %v932_v42  ;;  %v938_v44 = vsel %vm880_vm12, %v2532_v43, 0.0 }
 0x2e5   :  { %2539 = vpow2.f32 %v927_v41 }
 0x2e8   :  { %939 = vadd.xlane.f32.xlu1 %v938_v44 }
 0x2ea   :  { %v2534_v45 = vpop.eup %2533 }
 0x2eb   :  { %v941_v46 = vsel %vm880_vm12, %v2534_v45, 0.0  ;;  %v2536_v47 = vpop.eup %2535 }
 0x2ec   :  { %942 = vadd.xlane.f32.xlu0 %v941_v46  ;;  %v947_v49 = vsel %vm880_vm12, %v2536_v47, 0.0 }
 0x2ee   :  { %v2538_v48 = vpop.eup %2537 }
 0x2ef   :  { %v944_v50 = vsel %vm880_vm12, %v2538_v48, 0.0 }
 0x2f0   :  { %948 = vadd.xlane.f32.xlu0 %v947_v49  ;;  %945 = vadd.xlane.f32.xlu1 %v944_v50 }
 0x2f2   :  { %v2540_v51 = vpop.eup %2539 }
 0x2f3   :  { %v950_v54 = vsel %vm880_vm12, %v2540_v51, 0.0 }
 0x2f4   :  { %951 = vadd.xlane.f32.xlu1 %v950_v54 }
 0x365   :  { %v937_v62 = vpop.xlane.xlu0 %936 }
 0x367   :  { %v931_v61 = vpop.xlane.xlu1 %930 }
 0x368   :  { %2541 = vrcp.f32 %v931_v61  ;;  %v2223_v61 = vld [vmem:[%s3204_s7] ss:$0 sm:$0xff] }
 0x36d   :  { %v934_v63 = vpop.xlane.xlu1 %933 }
 0x36e   :  { %2543 = vrcp.f32 %v934_v63 }
 0x36f   :  { %2545 = vrcp.f32 %v937_v62 }
 0x371   :  { %v940_v1 = vpop.xlane.xlu1 %939 }
 0x372   :  { %2547 = vrcp.f32 %v940_v1 }
 0x375   :  { %v943_v2 = vpop.xlane.xlu0 %942  ;;  %v2542_v7 = vpop.eup %2541 }
 0x376   :  { %2549 = vrcp.f32 %v943_v2  ;;  %v961_v12 = vmul.f32 %v2542_v7, %v2528_v33 }
 0x379   :  { %v949_v8 = vpop.xlane.xlu0 %948  ;;  %v946_v9 = vpop.xlane.xlu1 %945 }
 0x37a   :  { %2551 = vrcp.f32 %v946_v9 }
 0x37b   :  { %v2544_v10 = vpop.eup %2543  ;;  %2553 = vrcp.f32 %v949_v8 }
 0x37c   :  { %v962_v14 = vmul.f32 %v2544_v10, %v2530_v40  ;;  %v2546_v15 = vpop.eup %2545 }
 0x37d   :  { %v952_v16 = vpop.xlane.xlu1 %951  ;;  %v963_v23 = vmul.f32 %v2546_v15, %v2926_v29  ;;  %v2505_v29 = vld [vmem:[%s3203_s6 + $0x8] sm:$0xff]  }
 0x37e   :  { %2555 = vrcp.f32 %v952_v16  ;;  %v969_v20 = vpack.c.bf16 %v962_v14, %v961_v12  ;;  %2397 = vmatpush3.bf16.msra.mxu0 %v2505_v29 }
 0x37f   :  { %v2548_v21 = vpop.eup %2547  ;;  %2398 = vmatprep.subr.bf16.mxu0 %v2702_v0 }
 0x380   :  { %2388 = vmatprep.mubr.msk.bf16.mxu1 %vm880_vm12, %v969_v20  ;;  %v964_v24 = vmul.f32 %v2548_v21, %v2532_v43 }
 0x382   :  { %v970_v25 = vpack.c.bf16 %v964_v24, %v963_v23  ;;  %2399 = vmatpush3.bf16.msra.mxu0 %v2506_v37 }
 0x383   :  { %v2550_v26 = vpop.eup %2549  ;;  %2412 = vmatprep.subr.bf16.mxu0 %v2702_v0 }
 0x384   :  { %2389 = vmatmul.mubr.msk.bf16.vlgmr.msra.gmra.mxu1 %vm880_vm12, %v970_v25  ;;  %v965_v30 = vmul.f32 %v2550_v26, %v2534_v45 }
 0x387   :  { %v2552_v27 = vpop.eup %2551 }
 0x388   :  { %v2554_v28 = vpop.eup %2553  ;;  %v966_v31 = vmul.f32 %v2552_v27, %v2538_v48 }
 0x389   :  { %v967_v34 = vmul.f32 %v2554_v28, %v2536_v47  ;;  %v2507_v28 = vld [vmem:[#allocation7 + $0x8] sm:$0xff]  }
 0x38a   :  { %v971_v33 = vpack.c.bf16 %v966_v31, %v965_v30  ;;  %2405 = vmatpush3.bf16.msra.mxu1 %v2507_v28  ;;  %v2509_v30 = vld [vmem:[%s3209_s12 + $0x18] sm:$0xff]   ;;  %v2514_v28 = vld [vmem:[%s3222_s2 + $0x10] sm:$0xff]  }
 0x38b   :  { %v2556_v32 = vpop.eup %2555  ;;  %2406 = vmatprep.subr.bf16.mxu1 %v2702_v0 }
 0x38c   :  { %v968_v35 = vmul.f32 %v2556_v32, %v2540_v51  ;;  %2392 = vmatprep.mubr.msk.bf16.mxu1 %vm880_vm12, %v971_v33 }
 0x38e   :  { %v972_v36 = vpack.c.bf16 %v968_v35, %v967_v34 }
 0x390   :  { %2393 = vmatmul.mubr.msk.bf16.gmra.mxu1 %vm880_vm12, %v972_v36 }
 0x391   :  { %2408 = vmatprep.mubr.msk.bf16.mxu1 %vm2703_vm0, %v2702_v0 }
 0x444   :  { %v2390_v38 = vpop.f32.mrf.mxu1 }
 0x445   :  { %v1053_v45 = vmul.f32 %v2390_v38, %v2866_v18  ;;  %v2227_v38 = vld [vmem:[%s3205_s8] ss:$0 sm:$0xff] }
 0x446   :  { %v1020_v39 = vpop.f32.mrf.mxu1 }
 0x447   :  { %v1051_v43 = vmul.f32 %v2861_v17, %v1020_v39 }
 0x448   :  { %v2391_v40 = vpop.f32.mrf.mxu1 }
 0x449   :  { %v1059_v49 = vadd.f32 %v1053_v45, %v1051_v43  ;;  %v1054_v50 = vmul.f32 %v2391_v40, %v2866_v18 }
 0x44a   :  { %v1023_v41 = vpop.f32.mrf.mxu1 }
 0x44b   :  { %v1052_v46 = vmul.f32 %v2861_v17, %v1023_v41 }
 0x44d   :  { %v1060_v52 = vadd.f32 %v1054_v50, %v1052_v46  ;;  %v2229_v50 = vld [vmem:[%s3208_s11] ss:$0 sm:$0xff] }
 0x450   :  { %v2394_v42 = vpop.f32.mrf.mxu1 }
 0x451   :  { %v1057_v55 = vmul.f32 %v2394_v42, %v2872_v22  ;;  %v2228_v42 = vld [vmem:[%s3206_s9] ss:$0 sm:$0xff] }
 0x452   :  { %v1036_v44 = vpop.f32.mrf.mxu1 }
 0x453   :  { %v1055_v47 = vmul.f32 %v2869_v19, %v1036_v44 }
 0x454   :  { %v2395_v48 = vpop.f32.mrf.mxu1 }
 0x455   :  { %v1061_v53 = vadd.f32 %v1059_v49, %v1055_v47  ;;  %v1058_v56 = vmul.f32 %v2395_v48, %v2872_v22  ;;  %v2510_v47 = vld [vmem:[%s3209_s12 + $0x10] sm:$0xff]   ;;  %v2511_v48 = vld [vmem:[%s3209_s12 + $0x8] sm:$0xff]   ;;  %v2512_v49 = vld [vmem:[%s3209_s12] sm:$0xff]  }
 0x456   :  { %v1039_v51 = vpop.f32.mrf.mxu1 }
 0x457   :  { %v1056_v54 = vmul.f32 %v2869_v19, %v1039_v51  ;;  %v1063_v58 = vadd.f32 %v1061_v53, %v1057_v55 }
 0x459   :  { %v1062_v57 = vadd.f32 %v1060_v52, %v1056_v54 }
 0x45b   :  { %v1064_v59 = vadd.f32 %v1062_v57, %v1058_v56 }
 0x45d   :  { %v1065_v60 = vpack.c.bf16 %v1064_v59, %v1063_v58 }
 0x45f   :  { %2401 = vmatmul.mubr.msk.bf16.vlgmr.msra.gmra.mxu0 %vm663_vm1, %v1065_v60  ;;  %v2233_v60 = vld [vmem:[%s3210_s13] ss:$0 sm:$0xff] }
 0x460   :  { %2420 = vmatprep.mubr.msk.bf16.mxu0 %vm2703_vm0, %v2702_v0  ;;  %2413 = vmatpush3.bf16.msra.mxu0 %v2509_v30 }
 0x461   :  { %2414 = vmatprep.subr.bf16.mxu0 %v2702_v0 }
 0x464   :  { %2415 = vmatpush3.bf16.msra.mxu0 %v2510_v47 }
 0x465   :  { %2416 = vmatprep.subr.bf16.mxu0 %v2702_v0 }
 0x468   :  { %2417 = vmatpush3.bf16.msra.mxu0 %v2511_v48  ;;  %v2516_v48 = vld [vmem:[%s3201_s4 + $0x10] sm:$0xff]  }
 0x469   :  { %2418 = vmatprep.subr.bf16.mxu0 %v2702_v0 }
 0x46c   :  { %2419 = vmatpush3.bf16.msra.mxu0 %v2512_v49 }
 0x51f   :  { %v1126_v62 = vpop.f32.mrf.mxu0 }
 0x520   :  { %v1127_v63 = vadd.f32 %v2223_v61, %v1126_v62 }
 0x521   :  { %v2402_v1 = vpop.f32.mrf.mxu0 }
 0x522   :  { %v1133_v2 = vadd.f32 %v1127_v63, %v2825_v3 }
 0x523   :  { %v1129_v7 = vpop.f32.mrf.mxu0 }
 0x524   :  { %v1130_v8 = vadd.f32 %v2223_v61, %v1129_v7  ;;  %v1137_v9 = vsel %vm663_vm1, %v1133_v2, 0.0 }
 0x525   :  { %1138 = vadd.xlane.f32.xlu0 %v1137_v9  ;;  %v2403_v10 = vpop.f32.mrf.mxu0 }
 0x526   :  { %v1134_v12 = vadd.f32 %v1130_v8, %v2827_v4  ;;  %v2508_v4 = vld [vmem:[#allocation7] sm:$0xff]  }
 0x527   :  { %2407 = vmatpush3.bf16.msra.mxu1 %v2508_v4 }
 0x528   :  { %v1140_v14 = vsel %vm663_vm1, %v1134_v12, 0.0  ;;  %2424 = vmatprep.subr.bf16.mxu1 %v2702_v0 }
 0x529   :  { %1141 = vadd.xlane.f32.xlu1 %v1140_v14 }
 0x5ae   :  { %v1139_v15 = vpop.xlane.xlu0 %1138 }
 0x5af   :  { %v1144_v16 = vmul.f32 0.03125, %v1139_v15 }
 0x5b1   :  { %v1146_v20 = vsub.f32 %v1133_v2, %v1144_v16 }
 0x5b2   :  { %v1142_v21 = vpop.xlane.xlu1 %1141 }
 0x5b3   :  { %v1145_v23 = vmul.f32 0.03125, %v1142_v21  ;;  %v1148_v24 = vmul.f32 %v1146_v20, %v1146_v20 }
 0x5b5   :  { %v1147_v25 = vsub.f32 %v1134_v12, %v1145_v23  ;;  %v1150_v3 = vsel %vm663_vm1, %v1148_v24, 0.0 }
 0x5b6   :  { %1151 = vadd.xlane.f32.xlu0 %v1150_v3 }
 0x5b7   :  { %v1149_v26 = vmul.f32 %v1147_v25, %v1147_v25 }
 0x5b9   :  { %v1153_v27 = vsel %vm663_vm1, %v1149_v26, 0.0 }
 0x5ba   :  { %1154 = vadd.xlane.f32.xlu1 %v1153_v27  ;;  %v2513_v27 = vld [vmem:[%s3222_s2 + $0x18] sm:$0xff]  }
 0x63f   :  { %v1152_v31 = vpop.xlane.xlu0 %1151 }
 0x640   :  { %v1156_v32 = vmul.f32 0.03125, %v1152_v31 }
 0x642   :  { %v1158_v33 = vadd.f32 1e-05, %v1156_v32 }
 0x643   :  { %v1155_v34 = vpop.xlane.xlu1 %1154 }
 0x644   :  { %2557 = vrsqrt.f32 %v1158_v33  ;;  %v1157_v35 = vmul.f32 0.03125, %v1155_v34 }
 0x646   :  { %v1159_v36 = vadd.f32 1e-05, %v1157_v35 }
 0x648   :  { %2559 = vrsqrt.f32 %v1159_v36  ;;  %v2239_v36 = vld [vmem:[%s3211_s14] ss:$0 sm:$0xff] }
 0x651   :  { %v2558_v29 = vpop.eup %2557 }
 0x652   :  { %v1162_v37 = vmul.f32 %v2558_v29, %v1146_v20 }
 0x654   :  { %v1170_v40 = vmul.f32 %v2227_v38, %v1162_v37 }
 0x655   :  { %v2560_v39 = vpop.eup %2559 }
 0x656   :  { %v1163_v41 = vmul.f32 %v2560_v39, %v1147_v25  ;;  %v1178_v44 = vadd.f32 %v2228_v42, %v1170_v40  ;;  %v2240_v39 = vld [vmem:[%s3212_s15] ss:$0 sm:$0xff] }
 0x658   :  { %v1171_v43 = vmul.f32 %v2227_v38, %v1163_v41 }
 0x65a   :  { %v1179_v45 = vadd.f32 %v2228_v42, %v1171_v43 }
 0x65c   :  { %v1180_v46 = vpack.c.bf16 %v1179_v45, %v1178_v44 }
 0x65e   :  { %2409 = vmatmul.mubr.msk.bf16.vlgmr.msra.gmra.mxu1 %vm663_vm1, %v1180_v46  ;;  %v2515_v46 = vld [vmem:[%s3201_s4 + $0x18] sm:$0xff]  }
 0x65f   :  { %2428 = vmatprep.mubr.msk.bf16.mxu1 %vm2703_vm0, %v2702_v0  ;;  %2425 = vmatpush3.bf16.msra.mxu1 %v2513_v27 }
 0x660   :  { %2426 = vmatprep.subr.bf16.mxu1 %v2702_v0 }
 0x663   :  { %2427 = vmatpush3.bf16.msra.mxu1 %v2514_v28 }
 0x664   :  { %2432 = vmatprep.subr.bf16.mxu1 %v2702_v0 }
 0x71e   :  { %v1241_v51 = vpop.f32.mrf.mxu1 }
 0x71f   :  { %v1242_v53 = vadd.f32 %v2229_v50, %v1241_v51 }
 0x720   :  { %v2410_v52 = vpop.f32.mrf.mxu1 }
 0x721   :  { %v1248_v57 = vmax.f32 %v1242_v53, 0.0 }
 0x722   :  { %v1244_v54 = vpop.f32.mrf.mxu1 }
 0x723   :  { %v1245_v55 = vadd.f32 %v2229_v50, %v1244_v54 }
 0x724   :  { %v2411_v56 = vpop.f32.mrf.mxu1 }
 0x725   :  { %v1249_v58 = vmax.f32 %v1245_v55, 0.0 }
 0x727   :  { %v1250_v59 = vpack.c.bf16 %v1249_v58, %v1248_v57 }
 0x729   :  { %2421 = vmatmul.mubr.msk.bf16.vlgmr.msra.gmra.mxu0 %vm1290_vm13, %v1250_v59 }
 0x7e9   :  { %v1328_v61 = vpop.f32.mrf.mxu0 }
 0x7ea   :  { %v1329_v62 = vadd.f32 %v2233_v60, %v1328_v61 }
 0x7eb   :  { %v2422_v63 = vpop.f32.mrf.mxu0 }
 0x7ec   :  { %v1335_v1 = vadd.f32 %v1329_v62, %v1178_v44 }
 0x7ed   :  { %v1331_v2 = vpop.f32.mrf.mxu0 }
 0x7ee   :  { %v1332_v7 = vadd.f32 %v2233_v60, %v1331_v2  ;;  %v1339_v8 = vsel %vm663_vm1, %v1335_v1, 0.0 }
 0x7ef   :  { %1340 = vadd.xlane.f32.xlu0 %v1339_v8  ;;  %v2423_v9 = vpop.f32.mrf.mxu0 }
 0x7f0   :  { %v1336_v10 = vadd.f32 %v1332_v7, %v1179_v45  ;;  %v2255_v9 = vld [vmem:[%s3202_s5 + $0x1] ss:$0 sm:$0xff] }
 0x7f2   :  { %v1342_v12 = vsel %vm663_vm1, %v1336_v10, 0.0 }
 0x7f3   :  { %1343 = vadd.xlane.f32.xlu1 %v1342_v12 }
 0x878   :  { %v1341_v14 = vpop.xlane.xlu0 %1340 }
 0x879   :  { %v1345_v15 = vmul.f32 0.03125, %v1341_v14 }
 0x87b   :  { %v1347_v16 = vsub.f32 %v1335_v1, %v1345_v15 }
 0x87c   :  { %v1344_v20 = vpop.xlane.xlu1 %1343 }
 0x87d   :  { %v1346_v21 = vmul.f32 0.03125, %v1344_v20  ;;  %v1349_v23 = vmul.f32 %v1347_v16, %v1347_v16 }
 0x87f   :  { %v1348_v24 = vsub.f32 %v1336_v10, %v1346_v21  ;;  %v1351_v25 = vsel %vm663_vm1, %v1349_v23, 0.0 }
 0x880   :  { %1352 = vadd.xlane.f32.xlu0 %v1351_v25 }
 0x881   :  { %v1350_v3 = vmul.f32 %v1348_v24, %v1348_v24 }
 0x883   :  { %v1354_v26 = vsel %vm663_vm1, %v1350_v3, 0.0 }
 0x884   :  { %1355 = vadd.xlane.f32.xlu1 %v1354_v26 }
 0x909   :  { %v1353_v4 = vpop.xlane.xlu0 %1352 }
 0x90a   :  { %v1357_v30 = vmul.f32 0.03125, %v1353_v4 }
 0x90c   :  { %v1359_v31 = vadd.f32 1e-05, %v1357_v30 }
 0x90d   :  { %v1356_v32 = vpop.xlane.xlu1 %1355 }
 0x90e   :  { %2561 = vrsqrt.f32 %v1359_v31  ;;  %v1358_v33 = vmul.f32 0.03125, %v1356_v32 }
 0x910   :  { %v1360_v34 = vadd.f32 1e-05, %v1358_v33 }
 0x912   :  { %2563 = vrsqrt.f32 %v1360_v34 }
 0x91b   :  { %v2562_v35 = vpop.eup %2561 }
 0x91c   :  { %v1363_v29 = vmul.f32 %v2562_v35, %v1347_v16 }
 0x91e   :  { %v1371_v37 = vmul.f32 %v2239_v36, %v1363_v29 }
 0x91f   :  { %v2564_v38 = vpop.eup %2563 }
 0x920   :  { %v1364_v40 = vmul.f32 %v2564_v38, %v1348_v24  ;;  %v3027_v42 = vadd.f32 %v2240_v39, %v1371_v37 }
 0x922   :  { %v1372_v41 = vmul.f32 %v2239_v36, %v1364_v40  ;;  %v1381_v44 = vadd.f32 %v3027_v42, %v2829_v5 }
 0x924   :  { %v3029_v43 = vadd.f32 %v2240_v39, %v1372_v41 }
 0x926   :  { %v1382_v45 = vadd.f32 %v3029_v43, %v2832_v6  ;;  %v1453_v5 = vpack.c.bf16 %v3029_v43, %v3027_v42  ;;  %v2246_v6 = vld [vmem:[%s3200_s3 + $0x1] ss:$0 sm:$0xff] }
 0x928   :  { %v1383_v47 = vpack.c.bf16 %v1382_v45, %v1381_v44 }
 0x92a   :  { %2429 = vmatmul.mubr.msk.bf16.vlgmr.msra.gmra.mxu1 %vm663_vm1, %v1383_v47 }
 0x92b   :  { %2433 = vmatpush3.bf16.msra.mxu1 %v2515_v46  ;;  %2436 = vmatprep.mubr.msk.bf16.mxu1 %vm2703_vm0, %v2702_v0 }
 0x92c   :  { %2434 = vmatprep.subr.bf16.mxu1 %v2702_v0 }
 0x92f   :  { %2435 = vmatpush3.bf16.msra.mxu1 %v2516_v48 }
 0x932   :  { %2437 = vmatmul.mubr.msk.bf16.vlgmr.msra.gmra.mxu1 %vm663_vm1, %v1453_v5 }
 0x9ea   :  { %v1446_v49 = vpop.f32.mrf.mxu1 }
 0x9eb   :  { %v1447_v50 = vadd.f32 %v2246_v6, %v1446_v49 }
 0x9ec   :  { %v2430_v51 = vpop.f32.mrf.mxu1 }
 0x9ed   :  { %v1525_v54 = vmul.f32 %v2866_v18, %v1447_v50  ;;  %v1523_v56 = vmul.f32 %v2861_v17, %v1447_v50  ;;  %v1527_v57 = vmul.f32 %v2869_v19, %v1447_v50  ;;  %v1529_v63 = vmul.f32 %v2872_v22, %v1447_v50 }
 0x9ee   :  { %v1449_v52 = vpop.f32.mrf.mxu1 }
 0x9ef   :  { %v1450_v53 = vadd.f32 %v2246_v6, %v1449_v52 }
 0x9f0   :  { %v2431_v55 = vpop.f32.mrf.mxu1 }
 0x9f1   :  { %v1526_v58 = vmul.f32 %v2866_v18, %v1450_v53  ;;  %v1535_v59 = vpack.c.bf16 %v1450_v53, %v1447_v50  ;;  %v1524_v60 = vmul.f32 %v2861_v17, %v1450_v53  ;;  %v1528_v61 = vmul.f32 %v2869_v19, %v1450_v53 }
 0x9f2   :  { %v1516_v62 = vpop.f32.mrf.mxu1  ;;  %v1530_v1 = vmul.f32 %v2872_v22, %v1450_v53 }
 0x9f3   :  { %1537 = vrot.lane.b32.xlu0 %v1535_v59, %s2704_s26  ;;  %v1531_v2 = vpack.c.bf16 %v1524_v60, %v1523_v56  ;;  %v1532_v7 = vpack.c.bf16 %v1526_v58, %v1525_v54  ;;  %v1533_v8 = vpack.c.bf16 %v1528_v61, %v1527_v57  ;;  %v1517_v15 = vadd.f32 %v2255_v9, %v1516_v62 }
 0x9f4   :  { %v2438_v10 = vpop.f32.mrf.mxu1  ;;  %v1534_v12 = vpack.c.bf16 %v1530_v1, %v1529_v63 }
 0x9f5   :  { %2442 = vmatprep.mubr.msk.bf16.mxu0 %vm663_vm1, %v1531_v2 }
 0x9f6   :  { %v1519_v14 = vpop.f32.mrf.mxu1 }
 0x9f7   :  { %v1520_v16 = vadd.f32 %v2255_v9, %v1519_v14 }
 0x9f8   :  { %v2439_v20 = vpop.f32.mrf.mxu1 }
 0x9f9   :  { %v1719_v21 = vpack.c.bf16 %v1520_v16, %v1517_v15 }
 0x9fb   :  { %2450 = vmatprep.subr.bf16.mxu1 %v1719_v21 }
 0x9fc   :  { %2451 = vmatpush3.bf16.msra.mxu1 %v1719_v21 }
 0x9fd   :  { %2468 = vmatprep.subr.bf16.mxu1 %v2702_v0 }
 0xa65   :  { %v1538_v23 = vpop.permute.xlu0 %1537 }
 0xa66   :  { %v1552_v24 = vsel %vm663_vm1, %v1538_v23, 0  ;;  %2489 = vmatprep.subr.msk.bf16.mxu0 %vm663_vm1, %v1538_v23 }
 0xa67   :  { %2441 = vmatpush3.bf16.xpose.msra.mxu0 %v1552_v24 }
 0xa68   :  { %2460 = vmatprep.subr.bf16.mxu0 %v2702_v0 }
 0xa6e   :  { %2443 = vmatmul.mubr.msk.bf16.vlgmr.msra.gmra.mxu0 %vm663_vm1, %v1532_v7 }
 0xa6f   :  { %2446 = vmatprep.mubr.msk.bf16.mxu0 %vm663_vm1, %v1533_v8 }
 0xa76   :  { %2447 = vmatmul.mubr.msk.bf16.gmra.mxu0 %vm663_vm1, %v1534_v12 }
 0xa77   :  { %2464 = vmatprep.mubr.msk.bf16.mxu0 %vm2703_vm0, %v2702_v0 }
 0xb2e   :  { %v2444_v25 = vpop.f32.mrf.mxu0 }
 0xb2f   :  { %v1621_v3 = vsel %vm150_vm9, %v2444_v25, -1e+30 }
 0xb30   :  { %v1588_v26 = vpop.f32.mrf.mxu0  ;;  %v1633_v27 = vsel %vm880_vm12, %v1621_v3, -inf }
 0xb31   :  { %v1619_v28 = vsel %vm150_vm9, %v1588_v26, -1e+30  ;;  %1634 = vmax.xlane.f32.xlu1 %v1633_v27 }
 0xb32   :  { %v2445_v4 = vpop.f32.mrf.mxu0  ;;  %v1627_v31 = vsel %vm880_vm12, %v1619_v28, -inf }
 0xb33   :  { %v1622_v32 = vsel %vm2851_vm6, %v2445_v4, -1e+30 }
 0xb34   :  { %v1591_v30 = vpop.f32.mrf.mxu0  ;;  %v1636_v36 = vsel %vm880_vm12, %v1622_v32, -inf }
 0xb35   :  { %1628 = vmax.xlane.f32.xlu1 %v1627_v31  ;;  %v1620_v37 = vsel %vm2851_vm6, %v1591_v30, -1e+30 }
 0xb36   :  { %v2448_v33 = vpop.f32.mrf.mxu0  ;;  %v1630_v39 = vsel %vm880_vm12, %v1620_v37, -inf }
 0xb37   :  { %v1625_v34 = vsel %vm150_vm9, %v2448_v33, -1e+30 }
 0xb38   :  { %v1604_v35 = vpop.f32.mrf.mxu0  ;;  %v1645_v29 = vsel %vm880_vm12, %v1625_v34, -inf }
 0xb39   :  { %1637 = vmax.xlane.f32.xlu1 %v1636_v36  ;;  %1646 = vmax.xlane.f32.xlu0 %v1645_v29  ;;  %v1623_v40 = vsel %vm150_vm9, %v1604_v35, -1e+30 }
 0xb3a   :  { %v2449_v38 = vpop.f32.mrf.mxu0  ;;  %v1639_v44 = vsel %vm880_vm12, %v1623_v40, -inf }
 0xb3b   :  { %v1626_v47 = vsel %vm2851_vm6, %v2449_v38, -1e+30 }
 0xb3c   :  { %v1607_v41 = vpop.f32.mrf.mxu0  ;;  %v1648_v48 = vsel %vm880_vm12, %v1626_v47, -inf }
 0xb3d   :  { %1631 = vmax.xlane.f32.xlu1 %v1630_v39  ;;  %v1624_v45 = vsel %vm2851_vm6, %v1607_v41, -1e+30 }
 0xb3e   :  { %v1642_v46 = vsel %vm880_vm12, %v1624_v45, -inf }
 0xb41   :  { %1640 = vmax.xlane.f32.xlu1 %v1639_v44 }
 0xb45   :  { %1643 = vmax.xlane.f32.xlu1 %v1642_v46 }
 0xb49   :  { %1649 = vmax.xlane.f32.xlu1 %v1648_v48 }
 0xbba   :  { %v1635_v5 = vpop.xlane.xlu1 %1634 }
 0xbbb   :  { %v1653_v11 = vsub.f32 %v1621_v3, %v1635_v5 }
 0xbbd   :  { %v1663_v6 = vmul.f32 1.442695, %v1653_v11 }
 0xbbe   :  { %v1629_v49 = vpop.xlane.xlu1 %1628 }
 0xbbf   :  { %2565 = vpow2.f32 %v1663_v6  ;;  %v1651_v50 = vsub.f32 %v1619_v28, %v1629_v49 }
 0xbc1   :  { %v1659_v51 = vmul.f32 1.442695, %v1651_v50 }
 0xbc2   :  { %v1638_v52 = vpop.xlane.xlu1 %1637  ;;  %v1647_v53 = vpop.xlane.xlu0 %1646 }
 0xbc3   :  { %2567 = vpow2.f32 %v1659_v51  ;;  %v1654_v54 = vsub.f32 %v1622_v32, %v1638_v52  ;;  %v1657_v55 = vsub.f32 %v1625_v34, %v1647_v53 }
 0xbc5   :  { %v1665_v56 = vmul.f32 1.442695, %v1654_v54  ;;  %v1671_v57 = vmul.f32 1.442695, %v1657_v55 }
 0xbc6   :  { %v1632_v13 = vpop.xlane.xlu1 %1631 }
 0xbc7   :  { %2569 = vpow2.f32 %v1665_v56  ;;  %v1652_v58 = vsub.f32 %v1620_v37, %v1632_v13  ;;  %v2518_v13 = vld [vmem:[%s3203_s6 + $0x10] sm:$0xff]  }
 0xbc8   :  { %2571 = vpow2.f32 %v1671_v57  ;;  %v2517_v57 = vld [vmem:[%s3203_s6 + $0x18] sm:$0xff]   ;;  %s2705_s6 = smov [#allocation8]  }
 0xbc9   :  { %v1661_v59 = vmul.f32 1.442695, %v1652_v58  ;;  %2461 = vmatpush3.bf16.msra.mxu0 %v2517_v57  ;;  %s2186_s22 = sshll.u32 %s2705_s6, 4  ;;  %s2187_s22 = int_to_ptr.vmem [resolvable:$true] %s2186_s22 }
 0xbca   :  { %v1641_v60 = vpop.xlane.xlu1 %1640  ;;  %2462 = vmatprep.subr.bf16.mxu0 %v2702_v0  ;;  %p2674_p2 = scmp.lt.s32.totalorder %s2187_s22, %s2187_s22 }
 0xbcb   :  { %2573 = vpow2.f32 %v1661_v59  ;;  %v1655_v61 = vsub.f32 %v1623_v40, %v1641_v60 }
 0xbcc   :  { %v2566_v62 = vpop.eup %2565 }
 0xbcd   :  { %v1667_v63 = vmul.f32 1.442695, %v1655_v61  ;;  %v1681_v1 = vsel %vm880_vm12, %v2566_v62, 0.0  ;;  %2463 = vmatpush3.bf16.msra.mxu0 %v2518_v13 }
 0xbce   :  { %1682 = vadd.xlane.f32.xlu1 %v1681_v1  ;;  %v1644_v2 = vpop.xlane.xlu1 %1643  ;;  %2476 = vmatprep.subr.bf16.mxu0 %v2702_v0 }
 0xbcf   :  { %2575 = vpow2.f32 %v1667_v63  ;;  %v1656_v7 = vsub.f32 %v1624_v45, %v1644_v2 }
 0xbd0   :  { %v2568_v8 = vpop.eup %2567 }
 0xbd1   :  { %v1669_v9 = vmul.f32 1.442695, %v1656_v7  ;;  %v1675_v10 = vsel %vm880_vm12, %v2568_v8, 0.0 }
 0xbd2   :  { %1676 = vadd.xlane.f32.xlu1 %v1675_v10  ;;  %v1650_v12 = vpop.xlane.xlu1 %1649 }
 0xbd3   :  { %2577 = vpow2.f32 %v1669_v9  ;;  %v1658_v14 = vsub.f32 %v1626_v47, %v1650_v12 }
 0xbd4   :  { %v2570_v15 = vpop.eup %2569 }
 0xbd5   :  { %v2572_v16 = vpop.eup %2571  ;;  %v1673_v20 = vmul.f32 1.442695, %v1658_v14  ;;  %v1684_v21 = vsel %vm880_vm12, %v2570_v15, 0.0 }
 0xbd6   :  { %v1693_v23 = vsel %vm880_vm12, %v2572_v16, 0.0  ;;  %1685 = vadd.xlane.f32.xlu1 %v1684_v21 }
 0xbd7   :  { %2579 = vpow2.f32 %v1673_v20  ;;  %1694 = vadd.xlane.f32.xlu0 %v1693_v23 }
 0xbd8   :  { %v2574_v24 = vpop.eup %2573 }
 0xbd9   :  { %v1678_v25 = vsel %vm880_vm12, %v2574_v24, 0.0 }
 0xbda   :  { %1679 = vadd.xlane.f32.xlu1 %v1678_v25 }
 0xbdc   :  { %v2576_v3 = vpop.eup %2575 }
 0xbdd   :  { %v1687_v26 = vsel %vm880_vm12, %v2576_v3, 0.0 }
 0xbde   :  { %1688 = vadd.xlane.f32.xlu1 %v1687_v26 }
 0xbe0   :  { %v2578_v27 = vpop.eup %2577 }
 0xbe1   :  { %v1690_v28 = vsel %vm880_vm12, %v2578_v27, 0.0 }
 0xbe2   :  { %1691 = vadd.xlane.f32.xlu1 %v1690_v28 }
 0xbe4   :  { %v2580_v4 = vpop.eup %2579 }
 0xbe5   :  { %v1696_v30 = vsel %vm880_vm12, %v2580_v4, 0.0 }
 0xbe6   :  { %1697 = vadd.xlane.f32.xlu1 %v1696_v30 }
 0xc57   :  { %v1683_v31 = vpop.xlane.xlu1 %1682 }
 0xc5b   :  { %v1677_v32 = vpop.xlane.xlu1 %1676 }
 0xc5f   :  { %v1686_v33 = vpop.xlane.xlu1 %1685 }
 0xc60   :  { %2581 = vrcp.f32 %v1686_v33  ;;  %v1695_v36 = vpop.xlane.xlu0 %1694 }
 0xc61   :  { %2583 = vrcp.f32 %v1677_v32 }
 0xc62   :  { %2585 = vrcp.f32 %v1683_v31 }
 0xc63   :  { %v1680_v34 = vpop.xlane.xlu1 %1679 }
 0xc64   :  { %2587 = vrcp.f32 %v1680_v34 }
 0xc67   :  { %v1689_v35 = vpop.xlane.xlu1 %1688 }
 0xc68   :  { %2589 = vrcp.f32 %v1689_v35 }
 0xc6b   :  { %v1692_v29 = vpop.xlane.xlu1 %1691 }
 0xc6c   :  { %2591 = vrcp.f32 %v1692_v29 }
 0xc6d   :  { %v2582_v37 = vpop.eup %2581  ;;  %2593 = vrcp.f32 %v1695_v36 }
 0xc6e   :  { %v2584_v38 = vpop.eup %2583  ;;  %v1710_v44 = vmul.f32 %v2582_v37, %v2570_v15 }
 0xc6f   :  { %v1698_v39 = vpop.xlane.xlu1 %1697  ;;  %v2586_v40 = vpop.eup %2585  ;;  %v1707_v45 = vmul.f32 %v2584_v38, %v2568_v8 }
 0xc70   :  { %2595 = vrcp.f32 %v1698_v39  ;;  %v1709_v47 = vmul.f32 %v2586_v40, %v2566_v62 }
 0xc71   :  { %v2588_v41 = vpop.eup %2587 }
 0xc72   :  { %v1708_v46 = vmul.f32 %v2588_v41, %v2574_v24  ;;  %v1716_v5 = vpack.c.bf16 %v1710_v44, %v1709_v47  ;;  %v2519_v44 = vld [vmem:[#allocation7 + $0x18] sm:$0xff]  }
 0xc74   :  { %v1715_v48 = vpack.c.bf16 %v1708_v46, %v1707_v45  ;;  %v2521_v45 = vld [vmem:[%s3209_s12 + $0x38] sm:$0xff]  }
 0xc75   :  { %v2590_v11 = vpop.eup %2589 }
 0xc76   :  { %2452 = vmatprep.mubr.msk.bf16.mxu1 %vm880_vm12, %v1715_v48  ;;  %v1711_v49 = vmul.f32 %v2590_v11, %v2576_v3 }
 0xc77   :  { %2453 = vmatmul.mubr.msk.bf16.vlgmr.msra.gmra.mxu1 %vm880_vm12, %v1716_v5 }
 0xc78   :  { %2469 = vmatpush3.bf16.msra.mxu1 %v2519_v44 }
 0xc79   :  { %v2592_v6 = vpop.eup %2591  ;;  %2470 = vmatprep.subr.bf16.mxu1 %v2702_v0 }
 0xc7a   :  { %v1712_v50 = vmul.f32 %v2592_v6, %v2578_v27  ;;  %v2594_v51 = vpop.eup %2593 }
 0xc7b   :  { %v1713_v54 = vmul.f32 %v2594_v51, %v2572_v16  ;;  %v2278_v51 = vld [vmem:[%s3205_s8 + $0x1] ss:$0 sm:$0xff] }
 0xc7c   :  { %v1717_v52 = vpack.c.bf16 %v1712_v50, %v1711_v49 }
 0xc7d   :  { %v2596_v53 = vpop.eup %2595 }
 0xc7e   :  { %2456 = vmatprep.mubr.msk.bf16.mxu1 %vm880_vm12, %v1717_v52  ;;  %v1714_v55 = vmul.f32 %v2596_v53, %v2580_v4 }
 0xc80   :  { %v1718_v56 = vpack.c.bf16 %v1714_v55, %v1713_v54  ;;  %v2279_v55 = vld [vmem:[%s3206_s9 + $0x1] ss:$0 sm:$0xff] }
 0xc82   :  { %2457 = vmatmul.mubr.msk.bf16.gmra.mxu1 %vm880_vm12, %v1718_v56 }
 0xc83   :  { %2472 = vmatprep.mubr.msk.bf16.mxu1 %vm2703_vm0, %v2702_v0 }
 0xd37   :  { %v2454_v58 = vpop.f32.mrf.mxu1 }
 0xd38   :  { %v1799_v2 = vmul.f32 %v2454_v58, %v2866_v18 }
 0xd39   :  { %v1766_v59 = vpop.f32.mrf.mxu1 }
 0xd3a   :  { %v1797_v63 = vmul.f32 %v2861_v17, %v1766_v59  ;;  %v2522_v59 = vld [vmem:[%s3209_s12 + $0x30] sm:$0xff]  }
 0xd3b   :  { %v2455_v60 = vpop.f32.mrf.mxu1 }
 0xd3c   :  { %v1805_v10 = vadd.f32 %v1799_v2, %v1797_v63  ;;  %v1800_v12 = vmul.f32 %v2455_v60, %v2866_v18  ;;  %v2523_v60 = vld [vmem:[%s3209_s12 + $0x28] sm:$0xff]  }
 0xd3d   :  { %v1769_v61 = vpop.f32.mrf.mxu1 }
 0xd3e   :  { %v1798_v7 = vmul.f32 %v2861_v17, %v1769_v61  ;;  %v2272_v17 = vld [vmem:[%s3204_s7 + $0x1] ss:$0 sm:$0xff]  ;;  %s2669_s7 = scalar_lea.vmem %s2187_s22, 256 }
 0xd3f   :  { %v2524_v61 = vld [vmem:[%s3209_s12 + $0x20] sm:$0xff]   ;;  %p2670_p1 = scmp.ne.s32.totalorder %s2187_s22, %s2669_s7  ;;  %p2675_p3 = scmp.lt.s32.totalorder %s2669_s7, %s2669_s7 }
 0xd40   :  { %v1806_v15 = vadd.f32 %v1800_v12, %v1798_v7 }
 0xd41   :  { %p2676_p4 = por %p2675_p3, %p2674_p2 }
 0xd42   :  { %v2458_v62 = vpop.f32.mrf.mxu1 }
 0xd43   :  { %v1803_v21 = vmul.f32 %v2458_v62, %v2872_v22  ;;  %v2281_v62 = vld [vmem:[%s3208_s11 + $0x1] ss:$0 sm:$0xff]  ;;  %p2677_p5 = pnand %p2676_p4, %p2670_p1 }
 0xd44   :  { %v1782_v1 = vpop.f32.mrf.mxu1 }
 0xd45   :  { %v1801_v8 = vmul.f32 %v2869_v19, %v1782_v1 }
 0xd46   :  { %v2459_v9 = vpop.f32.mrf.mxu1 }
 0xd47   :  { %v1807_v16 = vadd.f32 %v1805_v10, %v1801_v8  ;;  %v1804_v23 = vmul.f32 %v2459_v9, %v2872_v22 }
 0xd48   :  { %v1785_v14 = vpop.f32.mrf.mxu1 }
 0xd49   :  { %v1802_v20 = vmul.f32 %v2869_v19, %v1785_v14  ;;  %v1809_v25 = vadd.f32 %v1807_v16, %v1803_v21 }
 0xd4b   :  { %v1808_v24 = vadd.f32 %v1806_v15, %v1802_v20 }
 0xd4d   :  { %v1810_v3 = vadd.f32 %v1808_v24, %v1804_v23 }
 0xd4f   :  { %v1811_v26 = vpack.c.bf16 %v1810_v3, %v1809_v25 }
 0xd51   :  { %2465 = vmatmul.mubr.msk.bf16.vlgmr.msra.gmra.mxu0 %vm663_vm1, %v1811_v26 }
 0xd52   :  { %2484 = vmatprep.mubr.msk.bf16.mxu0 %vm2703_vm0, %v2702_v0  ;;  %2477 = vmatpush3.bf16.msra.mxu0 %v2521_v45 }
 0xd53   :  { %2478 = vmatprep.subr.bf16.mxu0 %v2702_v0 }
 0xd56   :  { %2479 = vmatpush3.bf16.msra.mxu0 %v2522_v59 }
 0xd57   :  { %2480 = vmatprep.subr.bf16.mxu0 %v2702_v0 }
 0xd5a   :  { %2481 = vmatpush3.bf16.msra.mxu0 %v2523_v60 }
 0xd5b   :  { %2482 = vmatprep.subr.bf16.mxu0 %v2702_v0  ;;  %v2294_v0 = vld [vmem:[%s3210_s13 + $0x1] ss:$0 sm:$0xff] }
 0xd5e   :  { %2483 = vmatpush3.bf16.msra.mxu0 %v2524_v61 }
 0xe11   :  { %v1874_v18 = vpop.f32.mrf.mxu0 }
 0xe12   :  { %v1875_v27 = vadd.f32 %v2272_v17, %v1874_v18 }
 0xe13   :  { %v2466_v19 = vpop.f32.mrf.mxu0 }
 0xe14   :  { %v1881_v28 = vadd.f32 %v1875_v27, %v3027_v42 }
 0xe15   :  { %v1877_v4 = vpop.f32.mrf.mxu0 }
 0xe16   :  { %v1878_v22 = vadd.f32 %v2272_v17, %v1877_v4  ;;  %v1887_v30 = vsel %vm663_vm1, %v1881_v28, 0.0 }
 0xe17   :  { %1888 = vadd.xlane.f32.xlu0 %v1887_v30  ;;  %v2467_v31 = vpop.f32.mrf.mxu0 }
 0xe18   :  { %v1882_v32 = vadd.f32 %v1878_v22, %v3029_v43  ;;  %v2520_v43 = vld [vmem:[#allocation7 + $0x10] sm:$0xff]  }
 0xe19   :  { %2471 = vmatpush3.bf16.msra.mxu1 %v2520_v43 }
 0xe1a   :  { %v1890_v33 = vsel %vm663_vm1, %v1882_v32, 0.0 }
 0xe1b   :  { %1891 = vadd.xlane.f32.xlu1 %v1890_v33 }
 0xea0   :  { %v1889_v34 = vpop.xlane.xlu0 %1888 }
 0xea1   :  { %v1893_v35 = vmul.f32 0.03125, %v1889_v34 }
 0xea3   :  { %v1895_v36 = vsub.f32 %v1881_v28, %v1893_v35 }
 0xea4   :  { %v1892_v29 = vpop.xlane.xlu1 %1891 }
 0xea5   :  { %v1894_v37 = vmul.f32 0.03125, %v1892_v29  ;;  %v1897_v38 = vmul.f32 %v1895_v36, %v1895_v36 }
 0xea7   :  { %v1896_v39 = vsub.f32 %v1882_v32, %v1894_v37  ;;  %v1899_v42 = vsel %vm663_vm1, %v1897_v38, 0.0 }
 0xea8   :  { %1900 = vadd.xlane.f32.xlu0 %v1899_v42  ;;  %v2302_v42 = vld [vmem:[%s3211_s14 + $0x1] ss:$0 sm:$0xff] }
 0xea9   :  { %v1898_v40 = vmul.f32 %v1896_v39, %v1896_v39 }
 0xeab   :  { %v1902_v41 = vsel %vm663_vm1, %v1898_v40, 0.0 }
 0xeac   :  { %1903 = vadd.xlane.f32.xlu1 %v1902_v41  ;;  %v2303_v41 = vld [vmem:[%s3212_s15 + $0x1] ss:$0 sm:$0xff] }
 0xf31   :  { %v1901_v46 = vpop.xlane.xlu0 %1900 }
 0xf32   :  { %v1905_v47 = vmul.f32 0.03125, %v1901_v46 }
 0xf34   :  { %v1907_v48 = vadd.f32 1e-05, %v1905_v47 }
 0xf35   :  { %v1904_v5 = vpop.xlane.xlu1 %1903 }
 0xf36   :  { %2597 = vrsqrt.f32 %v1907_v48  ;;  %v1906_v11 = vmul.f32 0.03125, %v1904_v5 }
 0xf38   :  { %v1908_v6 = vadd.f32 1e-05, %v1906_v11 }
 0xf3a   :  { %2599 = vrsqrt.f32 %v1908_v6 }
 0xf43   :  { %v2598_v49 = vpop.eup %2597 }
 0xf44   :  { %v1911_v50 = vmul.f32 %v2598_v49, %v1895_v36 }
 0xf46   :  { %v1919_v53 = vmul.f32 %v2278_v51, %v1911_v50 }
 0xf47   :  { %v2600_v52 = vpop.eup %2599 }
 0xf48   :  { %v1912_v54 = vmul.f32 %v2600_v52, %v1896_v39  ;;  %v1927_v57 = vadd.f32 %v2279_v55, %v1919_v53 }
 0xf4a   :  { %v1920_v56 = vmul.f32 %v2278_v51, %v1912_v54 }
 0xf4c   :  { %v1928_v13 = vadd.f32 %v2279_v55, %v1920_v56 }
 0xf4e   :  { %v1929_v58 = vpack.c.bf16 %v1928_v13, %v1927_v57 }
 0xf50   :  { %2473 = vmatmul.mubr.msk.bf16.vlgmr.msra.gmra.mxu1 %vm663_vm1, %v1929_v58 }
0x1010   :  { %v1992_v63 = vpop.f32.mrf.mxu1 }
0x1011   :  { %v1993_v2 = vadd.f32 %v2281_v62, %v1992_v63 }
0x1012   :  { %v2474_v1 = vpop.f32.mrf.mxu1 }
0x1013   :  { %v1999_v10 = vmax.f32 %v1993_v2, 0.0  ;;  %v2304_v1 = vld [vmem:[%s3213_s16] ss:$0 sm:$0xff] }
0x1014   :  { %v1995_v7 = vpop.f32.mrf.mxu1 }
0x1015   :  { %v1996_v8 = vadd.f32 %v2281_v62, %v1995_v7  ;;  %v2305_v7 = vld [vmem:[%s3214_s17] ss:$0 sm:$0xff] }
0x1016   :  { %v2475_v9 = vpop.f32.mrf.mxu1 }
0x1017   :  { %v2000_v12 = vmax.f32 %v1996_v8, 0.0 }
0x1019   :  { %v2001_v14 = vpack.c.bf16 %v2000_v12, %v1999_v10 }
0x101b   :  { %2485 = vmatmul.mubr.msk.bf16.vlgmr.msra.gmra.mxu0 %vm1290_vm13, %v2001_v14 }
0x10db   :  { %v2080_v15 = vpop.f32.mrf.mxu0 }
0x10dc   :  { %v2081_v16 = vadd.f32 %v2294_v0, %v2080_v15 }
0x10dd   :  { %v2486_v20 = vpop.f32.mrf.mxu0 }
0x10de   :  { %v2087_v21 = vadd.f32 %v2081_v16, %v1927_v57 }
0x10df   :  { %v2083_v23 = vpop.f32.mrf.mxu0 }
0x10e0   :  { %v2084_v24 = vadd.f32 %v2294_v0, %v2083_v23  ;;  %v2093_v25 = vsel %vm663_vm1, %v2087_v21, 0.0 }
0x10e1   :  { %2094 = vadd.xlane.f32.xlu0 %v2093_v25  ;;  %v2487_v3 = vpop.f32.mrf.mxu0 }
0x10e2   :  { %v2088_v26 = vadd.f32 %v2084_v24, %v1928_v13 }
0x10e4   :  { %v2096_v17 = vsel %vm663_vm1, %v2088_v26, 0.0 }
0x10e5   :  { %2097 = vadd.xlane.f32.xlu1 %v2096_v17 }
0x116a   :  { %v2095_v18 = vpop.xlane.xlu0 %2094 }
0x116b   :  { %v2099_v27 = vmul.f32 0.03125, %v2095_v18 }
0x116d   :  { %v2101_v19 = vsub.f32 %v2087_v21, %v2099_v27 }
0x116e   :  { %v2098_v28 = vpop.xlane.xlu1 %2097 }
0x116f   :  { %v2100_v4 = vmul.f32 0.03125, %v2098_v28  ;;  %v2103_v22 = vmul.f32 %v2101_v19, %v2101_v19 }
0x1171   :  { %v2102_v30 = vsub.f32 %v2088_v26, %v2100_v4  ;;  %v2105_v31 = vsel %vm663_vm1, %v2103_v22, 0.0 }
0x1172   :  { %2106 = vadd.xlane.f32.xlu0 %v2105_v31 }
0x1173   :  { %v2104_v32 = vmul.f32 %v2102_v30, %v2102_v30 }
0x1175   :  { %v2108_v33 = vsel %vm663_vm1, %v2104_v32, 0.0 }
0x1176   :  { %2109 = vadd.xlane.f32.xlu1 %v2108_v33 }
0x11fb   :  { %v2107_v34 = vpop.xlane.xlu0 %2106 }
0x11fc   :  { %v2111_v35 = vmul.f32 0.03125, %v2107_v34 }
0x11fe   :  { %v2113_v36 = vadd.f32 1e-05, %v2111_v35 }
0x11ff   :  { %v2110_v29 = vpop.xlane.xlu1 %2109 }
0x1200   :  { %2601 = vrsqrt.f32 %v2113_v36  ;;  %v2112_v37 = vmul.f32 0.03125, %v2110_v29 }
0x1202   :  { %v2114_v38 = vadd.f32 1e-05, %v2112_v37 }
0x1204   :  { %2603 = vrsqrt.f32 %v2114_v38 }
0x120d   :  { %v2602_v39 = vpop.eup %2601 }
0x120e   :  { %v2117_v40 = vmul.f32 %v2602_v39, %v2101_v19 }
0x1210   :  { %v2125_v44 = vmul.f32 %v2302_v42, %v2117_v40 }
0x1211   :  { %v2604_v43 = vpop.eup %2603 }
0x1212   :  { %v2133_v45 = vadd.f32 %v2303_v41, %v2125_v44  ;;  %v2118_v46 = vmul.f32 %v2604_v43, %v2102_v30 }
0x1214   :  { %v2137_v47 = vsel %vm663_vm1, %v2133_v45, 0.0  ;;  %v2126_v48 = vmul.f32 %v2302_v42, %v2118_v46 }
0x1215   :  { %2138 = vadd.xlane.f32.xlu0 %v2137_v47 }
0x1216   :  { %v2134_v5 = vadd.f32 %v2303_v41, %v2126_v48 }
0x1218   :  { %v2140_v11 = vsel %vm663_vm1, %v2134_v5, 0.0 }
0x1219   :  { %2141 = vadd.xlane.f32.xlu1 %v2140_v11 }
0x129e   :  { %v2139_v6 = vpop.xlane.xlu0 %2138 }
0x129f   :  { %v2143_v49 = vmul.f32 0.03125, %v2139_v6 }
0x12a1   :  { %v2145_v50 = vsub.f32 %v2133_v45, %v2143_v49 }
0x12a2   :  { %v2142_v51 = vpop.xlane.xlu1 %2141 }
0x12a3   :  { %v2144_v52 = vmul.f32 0.03125, %v2142_v51  ;;  %v2147_v53 = vmul.f32 %v2145_v50, %v2145_v50 }
0x12a5   :  { %v2146_v54 = vsub.f32 %v2134_v5, %v2144_v52  ;;  %v2149_v55 = vsel %vm663_vm1, %v2147_v53, 0.0 }
0x12a6   :  { %2150 = vadd.xlane.f32.xlu0 %v2149_v55 }
0x12a7   :  { %v2148_v56 = vmul.f32 %v2146_v54, %v2146_v54 }
0x12a9   :  { %v2152_v57 = vsel %vm663_vm1, %v2148_v56, 0.0 }
0x12aa   :  { %2153 = vadd.xlane.f32.xlu1 %v2152_v57 }
0x132f   :  { %v2151_v13 = vpop.xlane.xlu0 %2150 }
0x1330   :  { %v2155_v58 = vmul.f32 0.03125, %v2151_v13 }
0x1332   :  { %v2157_v59 = vadd.f32 1e-05, %v2155_v58 }
0x1333   :  { %v2154_v60 = vpop.xlane.xlu1 %2153 }
0x1334   :  { %2605 = vrsqrt.f32 %v2157_v59  ;;  %v2156_v61 = vmul.f32 0.03125, %v2154_v60 }
0x1336   :  { %v2158_v62 = vadd.f32 1e-05, %v2156_v61 }
0x1338   :  { %2607 = vrsqrt.f32 %v2158_v62 }
0x1341   :  { %v2606_v63 = vpop.eup %2605 }
0x1342   :  { %v2161_v2 = vmul.f32 %v2606_v63, %v2145_v50 }
0x1344   :  { %v2169_v8 = vmul.f32 %v2304_v1, %v2161_v2 }
0x1345   :  { %v2608_v9 = vpop.eup %2607 }
0x1346   :  { %v2162_v10 = vmul.f32 %v2608_v9, %v2146_v54  ;;  %v2177_v12 = vadd.f32 %v2305_v7, %v2169_v8 }
0x1348   :  { %v2170_v14 = vmul.f32 %v2304_v1, %v2162_v10  ;;  %2179 = vst.msk [vmem:[#allocation8] sm:$0xff] %vm663_vm1, %v2177_v12 }
0x134a   :  { %v2178_v0 = vadd.f32 %v2305_v7, %v2170_v14 }
0x134c   :  { %2180 = vst.msk [vmem:[#allocation8 + $0x8] sm:$0xff] %vm663_vm1, %v2178_v0 }
0x134d   :  { %2680 = shalt.err (!%p2677_p5)
}
0x134e   :  { %2192 = dma.vmem_to_hbm [thread:$0]  %s2187_s22, 256, %s3215_s18, [#allocation4], %s2697_s19, %s2697_s19, %s2698_s1  }
0x134f   :  { %2693 = dma.done.wait [#allocation4], 256  }
0x1350   :  { %2694 = vsyncadd [#allocation4], 4294967040 }
0x1351   :  { %2196 = vsyncpa [#allocation3], 1 }
0x1352   :  { %2197 = vsyncpa [#allocation6], 1 }
0x1353   :  { %2198 = vsyncpa [#allocation4], 1 }

</bundles_post_ra>
